<compile_context>
chip_gen: v7x
topology: tpu7x:2x2x1
jax: 0.10.0
libtpu: 0.0.40
codegen_flags: <defaults>
</compile_context>

<pallas_src>
import functools

import jax
import jax.numpy as jnp
from jax.experimental import pallas as pl
from jax.experimental.pallas import tpu as pltpu

# ----------------------------- configuration ------------------------------
# args.arch backbone -> embedding dim, args.mlp = "64-64-64"
N = 8                # local batch size (== args.batch_size, world_size == 1)
C, H, W = 4, 16, 16  # input image shape (NCHW)
D_IN = C * H * W     # flattened image
EMBED = 32           # backbone embedding dim
MLP = (64, 64, 64)   # projector spec: f = [EMBED, 64, 64, 64]
NUM_FEATURES = MLP[-1]

SIM_COEFF = 25.0
STD_COEFF = 25.0
COV_COEFF = 1.0

BN_EPS = 1e-5

# Row layout of the packed BN/bias parameter block (8, MLP[0]):
_B1, _G1, _BE1, _B2, _G2, _BE2 = 0, 1, 2, 3, 4, 5


# ------------------------------ fused kernel ------------------------------
def _fused_vicreg_kernel(x_ref, y_ref, wb_ref, w1_ref, w2_ref, w3_ref, bn_ref,
                         out_ref, *, batch_size, num_features,
                         sim_coeff, std_coeff, cov_coeff):
    bn = bn_ref[...]                                  # (8, 64) f32, read once

    def projector(img_bf16):
        # frozen backbone: flatten -> matmul (bf16 operands, f32 accumulation)
        h = jnp.dot(img_bf16, wb_ref[...],
                    preferred_element_type=jnp.float32)               # (N, EMBED)

        # layer 1: Linear -> BatchNorm1d (training-mode batch stats) -> ReLU
        z = jnp.dot(h.astype(jnp.bfloat16), w1_ref[...],
                    preferred_element_type=jnp.float32)
        z = z + bn[_B1:_B1 + 1, :]
        mu = jnp.mean(z, axis=0, keepdims=True)
        var = jnp.mean((z - mu) * (z - mu), axis=0, keepdims=True)    # biased var
        z = (z - mu) * jax.lax.rsqrt(var + BN_EPS) * bn[_G1:_G1 + 1, :] \
            + bn[_BE1:_BE1 + 1, :]
        z = jnp.maximum(z, 0.0)

        # layer 2: Linear -> BatchNorm1d -> ReLU
        z = jnp.dot(z.astype(jnp.bfloat16), w2_ref[...],
                    preferred_element_type=jnp.float32)
        z = z + bn[_B2:_B2 + 1, :]
        mu = jnp.mean(z, axis=0, keepdims=True)
        var = jnp.mean((z - mu) * (z - mu), axis=0, keepdims=True)
        z = (z - mu) * jax.lax.rsqrt(var + BN_EPS) * bn[_G2:_G2 + 1, :] \
            + bn[_BE2:_BE2 + 1, :]
        z = jnp.maximum(z, 0.0)

        # final Linear (no bias)
        return jnp.dot(z.astype(jnp.bfloat16), w3_ref[...],
                       preferred_element_type=jnp.float32)            # (N, F) f32

    # Per-view projector passes (BN stats computed per view, NOT on a concat).
    x = projector(x_ref[...])
    y = projector(y_ref[...])

    # representation loss: MSE
    d = x - y
    repr_loss = jnp.mean(d * d, keepdims=True)                        # (1, 1)

    # (FullGatherLayer == identity for world_size 1) -> center
    xm = x - jnp.mean(x, axis=0, keepdims=True)
    ym = y - jnp.mean(y, axis=0, keepdims=True)

    nb = x.shape[0]
    var_x = jnp.sum(xm * xm, axis=0, keepdims=True) / (nb - 1)        # unbiased
    var_y = jnp.sum(ym * ym, axis=0, keepdims=True) / (nb - 1)
    std_x = jnp.sqrt(var_x + 1e-4)
    std_y = jnp.sqrt(var_y + 1e-4)
    std_loss = (jnp.mean(jnp.maximum(1.0 - std_x, 0.0), keepdims=True)
                + jnp.mean(jnp.maximum(1.0 - std_y, 0.0), keepdims=True)) * 0.5

    # covariance: x.T @ x / (batch_size - 1), contracting over the batch axis
    dn = (((0,), (0,)), ((), ()))
    cov_x = jax.lax.dot_general(xm, xm, dn,
                                preferred_element_type=jnp.float32) / (batch_size - 1)
    cov_y = jax.lax.dot_general(ym, ym, dn,
                                preferred_element_type=jnp.float32) / (batch_size - 1)

    # single off-diagonal mask, reused for both covariance matrices
    f = cov_x.shape[0]
    rows = jax.lax.broadcasted_iota(jnp.int32, (f, f), 0)
    cols = jax.lax.broadcasted_iota(jnp.int32, (f, f), 1)
    off = (rows != cols).astype(jnp.float32)
    cov_loss = (jnp.sum(cov_x * cov_x * off, keepdims=True)
                + jnp.sum(cov_y * cov_y * off, keepdims=True)) / num_features

    loss = sim_coeff * repr_loss + std_coeff * std_loss + cov_coeff * cov_loss

    # pack the four scalars into a single (1, 4) output tile
    lane = jax.lax.broadcasted_iota(jnp.int32, (1, 4), 1)
    out_ref[...] = jnp.where(lane == 0, loss,
                   jnp.where(lane == 1, repr_loss,
                   jnp.where(lane == 2, std_loss, cov_loss)))


# ------------------------------ full forward ------------------------------
def vicreg_forward(x_img, y_img, params):
    # flatten NCHW -> (N, C*H*W), row-major (matches torch .view semantics);
    # bf16 inputs feed the bf16 MXU path (f32 accumulation inside the kernel).
    x_flat = x_img.reshape(N, D_IN).astype(jnp.bfloat16)
    y_flat = y_img.reshape(N, D_IN).astype(jnp.bfloat16)

    kernel = functools.partial(
        _fused_vicreg_kernel,
        batch_size=N, num_features=NUM_FEATURES,
        sim_coeff=SIM_COEFF, std_coeff=STD_COEFF, cov_coeff=COV_COEFF)

    vmem = pl.BlockSpec(memory_space=pltpu.MemorySpace.VMEM)
    out = pl.pallas_call(
        kernel,
        out_shape=jax.ShapeDtypeStruct((1, 4), jnp.float32),
        in_specs=[vmem] * 7,
        out_specs=vmem,
    )(x_flat, y_flat, *params)
    return (out[0, 0], out[0, 1], out[0, 2], out[0, 3])


def init_params(key):
    ks = jax.random.split(key, 4)
    # frozen backbone + projector linear weights in bf16 (matmul operands)
    wb = (0.02 * jax.random.normal(ks[0], (D_IN, EMBED), jnp.float32)).astype(jnp.bfloat16)
    w1 = (0.1 * jax.random.normal(ks[1], (EMBED, MLP[0]), jnp.float32)).astype(jnp.bfloat16)
    w2 = (0.1 * jax.random.normal(ks[2], (MLP[0], MLP[1]), jnp.float32)).astype(jnp.bfloat16)
    w3 = (0.1 * jax.random.normal(ks[3], (MLP[1], MLP[2]), jnp.float32)).astype(jnp.bfloat16)
    # packed BN/bias block (f32): rows = [b1, g1, be1, b2, g2, be2, 0, 0]
    bn = jnp.zeros((8, MLP[0]), jnp.float32)
    bn = bn.at[_G1].set(1.0).at[_G2].set(1.0)
    return (wb, w1, w2, w3, bn)


if __name__ == "__main__":
    key = jax.random.PRNGKey(0)
    kx, ky, kp = jax.random.split(key, 3)
    x_img = jax.random.normal(kx, (N, C, H, W), jnp.float32)
    y_img = x_img + 0.1 * jax.random.normal(ky, (N, C, H, W), jnp.float32)
    params = init_params(kp)

    loss, repr_loss, std_loss, cov_loss = jax.block_until_ready(
        jax.jit(vicreg_forward)(x_img, y_img, params))

    assert all(jnp.isfinite(v) for v in (loss, repr_loss, std_loss, cov_loss))
    print("KERNEL_OK")
</pallas_src>

<mosaic_0001>
module attributes {stable_mosaic.version = 11 : i64} {
  func.func @_fused_vicreg_kernel(%arg0: memref<8x1024xbf16, #tpu.memory_space<vmem>>, %arg1: memref<8x1024xbf16, #tpu.memory_space<vmem>>, %arg2: memref<1024x32xbf16, #tpu.memory_space<vmem>>, %arg3: memref<32x64xbf16, #tpu.memory_space<vmem>>, %arg4: memref<64x64xbf16, #tpu.memory_space<vmem>>, %arg5: memref<64x64xbf16, #tpu.memory_space<vmem>>, %arg6: memref<8x64xf32, #tpu.memory_space<vmem>>, %arg7: memref<1x4xf32, #tpu.memory_space<vmem>>) attributes {dimension_semantics = [], scalar_prefetch = 0 : i64, scratch_operands = 0 : i64, tpu.core_type = #tpu.core_type<tc>} {
    %c0 = arith.constant 0 : index
    %c0_0 = arith.constant 0 : index
    %0 = vector.load %arg6[%c0, %c0_0] : memref<8x64xf32, #tpu.memory_space<vmem>>, vector<8x64xf32>
    %c0_1 = arith.constant 0 : index
    %c0_2 = arith.constant 0 : index
    %1 = vector.load %arg0[%c0_1, %c0_2] : memref<8x1024xbf16, #tpu.memory_space<vmem>>, vector<8x1024xbf16>
    %c0_3 = arith.constant 0 : index
    %c0_4 = arith.constant 0 : index
    %2 = vector.load %arg2[%c0_3, %c0_4] : memref<1024x32xbf16, #tpu.memory_space<vmem>>, vector<1024x32xbf16>
    %cst = arith.constant dense<0.000000e+00> : vector<8x32xf32>
    %3 = tpu.matmul %1, %2, %cst {dimension_numbers = #tpu.dot_dimension_numbers<[1], [0], [0], [1], [0, 0, 1, 1], [], []>} : vector<8x1024xbf16>, vector<1024x32xbf16>, vector<8x32xf32> -> vector<8x32xf32>
    %4 = arith.truncf %3 : vector<8x32xf32> to vector<8x32xbf16>
    %c0_5 = arith.constant 0 : index
    %c0_6 = arith.constant 0 : index
    %5 = vector.load %arg3[%c0_5, %c0_6] : memref<32x64xbf16, #tpu.memory_space<vmem>>, vector<32x64xbf16>
    %cst_7 = arith.constant dense<0.000000e+00> : vector<8x64xf32>
    %6 = tpu.matmul %4, %5, %cst_7 {dimension_numbers = #tpu.dot_dimension_numbers<[1], [0], [0], [1], [0, 0, 1, 1], [], []>} : vector<8x32xbf16>, vector<32x64xbf16>, vector<8x64xf32> -> vector<8x64xf32>
    %7 = vector.extract_strided_slice %0 {offsets = [0, 0], sizes = [1, 64], strides = [1, 1]} : vector<8x64xf32> to vector<1x64xf32>
    %8 = vector.broadcast %7 : vector<1x64xf32> to vector<8x64xf32>
    %9 = arith.addf %6, %8 : vector<8x64xf32>
    %cst_8 = arith.constant dense<0.000000e+00> : vector<64xf32>
    %10 = vector.multi_reduction <add>, %9, %cst_8 [0] : vector<8x64xf32> to vector<64xf32>
    %11 = vector.shape_cast %10 : vector<64xf32> to vector<1x64xf32>
    %cst_9 = arith.constant 8.000000e+00 : f32
    %12 = vector.broadcast %cst_9 : f32 to vector<1x64xf32>
    %13 = arith.divf %11, %12 : vector<1x64xf32>
    %14 = vector.broadcast %13 : vector<1x64xf32> to vector<8x64xf32>
    %15 = arith.subf %9, %14 : vector<8x64xf32>
    %16 = vector.broadcast %13 : vector<1x64xf32> to vector<8x64xf32>
    %17 = arith.subf %9, %16 : vector<8x64xf32>
    %18 = arith.mulf %15, %17 : vector<8x64xf32>
    %cst_10 = arith.constant dense<0.000000e+00> : vector<64xf32>
    %19 = vector.multi_reduction <add>, %18, %cst_10 [0] : vector<8x64xf32> to vector<64xf32>
    %20 = vector.shape_cast %19 : vector<64xf32> to vector<1x64xf32>
    %cst_11 = arith.constant 8.000000e+00 : f32
    %21 = vector.broadcast %cst_11 : f32 to vector<1x64xf32>
    %22 = arith.divf %20, %21 : vector<1x64xf32>
    %23 = vector.broadcast %13 : vector<1x64xf32> to vector<8x64xf32>
    %24 = arith.subf %9, %23 : vector<8x64xf32>
    %cst_12 = arith.constant 9.99999974E-6 : f32
    %25 = vector.broadcast %cst_12 : f32 to vector<1x64xf32>
    %26 = arith.addf %22, %25 : vector<1x64xf32>
    %27 = math.rsqrt %26 : vector<1x64xf32>
    %28 = vector.broadcast %27 : vector<1x64xf32> to vector<8x64xf32>
    %29 = arith.mulf %24, %28 : vector<8x64xf32>
    %30 = vector.extract_strided_slice %0 {offsets = [1, 0], sizes = [1, 64], strides = [1, 1]} : vector<8x64xf32> to vector<1x64xf32>
    %31 = vector.broadcast %30 : vector<1x64xf32> to vector<8x64xf32>
    %32 = arith.mulf %29, %31 : vector<8x64xf32>
    %33 = vector.extract_strided_slice %0 {offsets = [2, 0], sizes = [1, 64], strides = [1, 1]} : vector<8x64xf32> to vector<1x64xf32>
    %34 = vector.broadcast %33 : vector<1x64xf32> to vector<8x64xf32>
    %35 = arith.addf %32, %34 : vector<8x64xf32>
    %cst_13 = arith.constant 0.000000e+00 : f32
    %36 = vector.broadcast %cst_13 : f32 to vector<8x64xf32>
    %37 = arith.maximumf %35, %36 : vector<8x64xf32>
    %38 = arith.truncf %37 : vector<8x64xf32> to vector<8x64xbf16>
    %c0_14 = arith.constant 0 : index
    %c0_15 = arith.constant 0 : index
    %39 = vector.load %arg4[%c0_14, %c0_15] : memref<64x64xbf16, #tpu.memory_space<vmem>>, vector<64x64xbf16>
    %cst_16 = arith.constant dense<0.000000e+00> : vector<8x64xf32>
    %40 = tpu.matmul %38, %39, %cst_16 {dimension_numbers = #tpu.dot_dimension_numbers<[1], [0], [0], [1], [0, 0, 1, 1], [], []>} : vector<8x64xbf16>, vector<64x64xbf16>, vector<8x64xf32> -> vector<8x64xf32>
    %41 = vector.extract_strided_slice %0 {offsets = [3, 0], sizes = [1, 64], strides = [1, 1]} : vector<8x64xf32> to vector<1x64xf32>
    %42 = vector.broadcast %41 : vector<1x64xf32> to vector<8x64xf32>
    %43 = arith.addf %40, %42 : vector<8x64xf32>
    %cst_17 = arith.constant dense<0.000000e+00> : vector<64xf32>
    %44 = vector.multi_reduction <add>, %43, %cst_17 [0] : vector<8x64xf32> to vector<64xf32>
    %45 = vector.shape_cast %44 : vector<64xf32> to vector<1x64xf32>
    %cst_18 = arith.constant 8.000000e+00 : f32
    %46 = vector.broadcast %cst_18 : f32 to vector<1x64xf32>
    %47 = arith.divf %45, %46 : vector<1x64xf32>
    %48 = vector.broadcast %47 : vector<1x64xf32> to vector<8x64xf32>
    %49 = arith.subf %43, %48 : vector<8x64xf32>
    %50 = vector.broadcast %47 : vector<1x64xf32> to vector<8x64xf32>
    %51 = arith.subf %43, %50 : vector<8x64xf32>
    %52 = arith.mulf %49, %51 : vector<8x64xf32>
    %cst_19 = arith.constant dense<0.000000e+00> : vector<64xf32>
    %53 = vector.multi_reduction <add>, %52, %cst_19 [0] : vector<8x64xf32> to vector<64xf32>
    %54 = vector.shape_cast %53 : vector<64xf32> to vector<1x64xf32>
    %cst_20 = arith.constant 8.000000e+00 : f32
    %55 = vector.broadcast %cst_20 : f32 to vector<1x64xf32>
    %56 = arith.divf %54, %55 : vector<1x64xf32>
    %57 = vector.broadcast %47 : vector<1x64xf32> to vector<8x64xf32>
    %58 = arith.subf %43, %57 : vector<8x64xf32>
    %cst_21 = arith.constant 9.99999974E-6 : f32
    %59 = vector.broadcast %cst_21 : f32 to vector<1x64xf32>
    %60 = arith.addf %56, %59 : vector<1x64xf32>
    %61 = math.rsqrt %60 : vector<1x64xf32>
    %62 = vector.broadcast %61 : vector<1x64xf32> to vector<8x64xf32>
    %63 = arith.mulf %58, %62 : vector<8x64xf32>
    %64 = vector.extract_strided_slice %0 {offsets = [4, 0], sizes = [1, 64], strides = [1, 1]} : vector<8x64xf32> to vector<1x64xf32>
    %65 = vector.broadcast %64 : vector<1x64xf32> to vector<8x64xf32>
    %66 = arith.mulf %63, %65 : vector<8x64xf32>
    %67 = vector.extract_strided_slice %0 {offsets = [5, 0], sizes = [1, 64], strides = [1, 1]} : vector<8x64xf32> to vector<1x64xf32>
    %68 = vector.broadcast %67 : vector<1x64xf32> to vector<8x64xf32>
    %69 = arith.addf %66, %68 : vector<8x64xf32>
    %cst_22 = arith.constant 0.000000e+00 : f32
    %70 = vector.broadcast %cst_22 : f32 to vector<8x64xf32>
    %71 = arith.maximumf %69, %70 : vector<8x64xf32>
    %72 = arith.truncf %71 : vector<8x64xf32> to vector<8x64xbf16>
    %c0_23 = arith.constant 0 : index
    %c0_24 = arith.constant 0 : index
    %73 = vector.load %arg5[%c0_23, %c0_24] : memref<64x64xbf16, #tpu.memory_space<vmem>>, vector<64x64xbf16>
    %cst_25 = arith.constant dense<0.000000e+00> : vector<8x64xf32>
    %74 = tpu.matmul %72, %73, %cst_25 {dimension_numbers = #tpu.dot_dimension_numbers<[1], [0], [0], [1], [0, 0, 1, 1], [], []>} : vector<8x64xbf16>, vector<64x64xbf16>, vector<8x64xf32> -> vector<8x64xf32>
    %c0_26 = arith.constant 0 : index
    %c0_27 = arith.constant 0 : index
    %75 = vector.load %arg1[%c0_26, %c0_27] : memref<8x1024xbf16, #tpu.memory_space<vmem>>, vector<8x1024xbf16>
    %c0_28 = arith.constant 0 : index
    %c0_29 = arith.constant 0 : index
    %76 = vector.load %arg2[%c0_28, %c0_29] : memref<1024x32xbf16, #tpu.memory_space<vmem>>, vector<1024x32xbf16>
    %cst_30 = arith.constant dense<0.000000e+00> : vector<8x32xf32>
    %77 = tpu.matmul %75, %76, %cst_30 {dimension_numbers = #tpu.dot_dimension_numbers<[1], [0], [0], [1], [0, 0, 1, 1], [], []>} : vector<8x1024xbf16>, vector<1024x32xbf16>, vector<8x32xf32> -> vector<8x32xf32>
    %78 = arith.truncf %77 : vector<8x32xf32> to vector<8x32xbf16>
    %c0_31 = arith.constant 0 : index
    %c0_32 = arith.constant 0 : index
    %79 = vector.load %arg3[%c0_31, %c0_32] : memref<32x64xbf16, #tpu.memory_space<vmem>>, vector<32x64xbf16>
    %cst_33 = arith.constant dense<0.000000e+00> : vector<8x64xf32>
    %80 = tpu.matmul %78, %79, %cst_33 {dimension_numbers = #tpu.dot_dimension_numbers<[1], [0], [0], [1], [0, 0, 1, 1], [], []>} : vector<8x32xbf16>, vector<32x64xbf16>, vector<8x64xf32> -> vector<8x64xf32>
    %81 = vector.extract_strided_slice %0 {offsets = [0, 0], sizes = [1, 64], strides = [1, 1]} : vector<8x64xf32> to vector<1x64xf32>
    %82 = vector.broadcast %81 : vector<1x64xf32> to vector<8x64xf32>
    %83 = arith.addf %80, %82 : vector<8x64xf32>
    %cst_34 = arith.constant dense<0.000000e+00> : vector<64xf32>
    %84 = vector.multi_reduction <add>, %83, %cst_34 [0] : vector<8x64xf32> to vector<64xf32>
    %85 = vector.shape_cast %84 : vector<64xf32> to vector<1x64xf32>
    %cst_35 = arith.constant 8.000000e+00 : f32
    %86 = vector.broadcast %cst_35 : f32 to vector<1x64xf32>
    %87 = arith.divf %85, %86 : vector<1x64xf32>
    %88 = vector.broadcast %87 : vector<1x64xf32> to vector<8x64xf32>
    %89 = arith.subf %83, %88 : vector<8x64xf32>
    %90 = vector.broadcast %87 : vector<1x64xf32> to vector<8x64xf32>
    %91 = arith.subf %83, %90 : vector<8x64xf32>
    %92 = arith.mulf %89, %91 : vector<8x64xf32>
    %cst_36 = arith.constant dense<0.000000e+00> : vector<64xf32>
    %93 = vector.multi_reduction <add>, %92, %cst_36 [0] : vector<8x64xf32> to vector<64xf32>
    %94 = vector.shape_cast %93 : vector<64xf32> to vector<1x64xf32>
    %cst_37 = arith.constant 8.000000e+00 : f32
    %95 = vector.broadcast %cst_37 : f32 to vector<1x64xf32>
    %96 = arith.divf %94, %95 : vector<1x64xf32>
    %97 = vector.broadcast %87 : vector<1x64xf32> to vector<8x64xf32>
    %98 = arith.subf %83, %97 : vector<8x64xf32>
    %cst_38 = arith.constant 9.99999974E-6 : f32
    %99 = vector.broadcast %cst_38 : f32 to vector<1x64xf32>
    %100 = arith.addf %96, %99 : vector<1x64xf32>
    %101 = math.rsqrt %100 : vector<1x64xf32>
    %102 = vector.broadcast %101 : vector<1x64xf32> to vector<8x64xf32>
    %103 = arith.mulf %98, %102 : vector<8x64xf32>
    %104 = vector.extract_strided_slice %0 {offsets = [1, 0], sizes = [1, 64], strides = [1, 1]} : vector<8x64xf32> to vector<1x64xf32>
    %105 = vector.broadcast %104 : vector<1x64xf32> to vector<8x64xf32>
    %106 = arith.mulf %103, %105 : vector<8x64xf32>
    %107 = vector.extract_strided_slice %0 {offsets = [2, 0], sizes = [1, 64], strides = [1, 1]} : vector<8x64xf32> to vector<1x64xf32>
    %108 = vector.broadcast %107 : vector<1x64xf32> to vector<8x64xf32>
    %109 = arith.addf %106, %108 : vector<8x64xf32>
    %cst_39 = arith.constant 0.000000e+00 : f32
    %110 = vector.broadcast %cst_39 : f32 to vector<8x64xf32>
    %111 = arith.maximumf %109, %110 : vector<8x64xf32>
    %112 = arith.truncf %111 : vector<8x64xf32> to vector<8x64xbf16>
    %c0_40 = arith.constant 0 : index
    %c0_41 = arith.constant 0 : index
    %113 = vector.load %arg4[%c0_40, %c0_41] : memref<64x64xbf16, #tpu.memory_space<vmem>>, vector<64x64xbf16>
    %cst_42 = arith.constant dense<0.000000e+00> : vector<8x64xf32>
    %114 = tpu.matmul %112, %113, %cst_42 {dimension_numbers = #tpu.dot_dimension_numbers<[1], [0], [0], [1], [0, 0, 1, 1], [], []>} : vector<8x64xbf16>, vector<64x64xbf16>, vector<8x64xf32> -> vector<8x64xf32>
    %115 = vector.extract_strided_slice %0 {offsets = [3, 0], sizes = [1, 64], strides = [1, 1]} : vector<8x64xf32> to vector<1x64xf32>
    %116 = vector.broadcast %115 : vector<1x64xf32> to vector<8x64xf32>
    %117 = arith.addf %114, %116 : vector<8x64xf32>
    %cst_43 = arith.constant dense<0.000000e+00> : vector<64xf32>
    %118 = vector.multi_reduction <add>, %117, %cst_43 [0] : vector<8x64xf32> to vector<64xf32>
    %119 = vector.shape_cast %118 : vector<64xf32> to vector<1x64xf32>
    %cst_44 = arith.constant 8.000000e+00 : f32
    %120 = vector.broadcast %cst_44 : f32 to vector<1x64xf32>
    %121 = arith.divf %119, %120 : vector<1x64xf32>
    %122 = vector.broadcast %121 : vector<1x64xf32> to vector<8x64xf32>
    %123 = arith.subf %117, %122 : vector<8x64xf32>
    %124 = vector.broadcast %121 : vector<1x64xf32> to vector<8x64xf32>
    %125 = arith.subf %117, %124 : vector<8x64xf32>
    %126 = arith.mulf %123, %125 : vector<8x64xf32>
    %cst_45 = arith.constant dense<0.000000e+00> : vector<64xf32>
    %127 = vector.multi_reduction <add>, %126, %cst_45 [0] : vector<8x64xf32> to vector<64xf32>
    %128 = vector.shape_cast %127 : vector<64xf32> to vector<1x64xf32>
    %cst_46 = arith.constant 8.000000e+00 : f32
    %129 = vector.broadcast %cst_46 : f32 to vector<1x64xf32>
    %130 = arith.divf %128, %129 : vector<1x64xf32>
    %131 = vector.broadcast %121 : vector<1x64xf32> to vector<8x64xf32>
    %132 = arith.subf %117, %131 : vector<8x64xf32>
    %cst_47 = arith.constant 9.99999974E-6 : f32
    %133 = vector.broadcast %cst_47 : f32 to vector<1x64xf32>
    %134 = arith.addf %130, %133 : vector<1x64xf32>
    %135 = math.rsqrt %134 : vector<1x64xf32>
    %136 = vector.broadcast %135 : vector<1x64xf32> to vector<8x64xf32>
    %137 = arith.mulf %132, %136 : vector<8x64xf32>
    %138 = vector.extract_strided_slice %0 {offsets = [4, 0], sizes = [1, 64], strides = [1, 1]} : vector<8x64xf32> to vector<1x64xf32>
    %139 = vector.broadcast %138 : vector<1x64xf32> to vector<8x64xf32>
    %140 = arith.mulf %137, %139 : vector<8x64xf32>
    %141 = vector.extract_strided_slice %0 {offsets = [5, 0], sizes = [1, 64], strides = [1, 1]} : vector<8x64xf32> to vector<1x64xf32>
    %142 = vector.broadcast %141 : vector<1x64xf32> to vector<8x64xf32>
    %143 = arith.addf %140, %142 : vector<8x64xf32>
    %cst_48 = arith.constant 0.000000e+00 : f32
    %144 = vector.broadcast %cst_48 : f32 to vector<8x64xf32>
    %145 = arith.maximumf %143, %144 : vector<8x64xf32>
    %146 = arith.truncf %145 : vector<8x64xf32> to vector<8x64xbf16>
    %c0_49 = arith.constant 0 : index
    %c0_50 = arith.constant 0 : index
    %147 = vector.load %arg5[%c0_49, %c0_50] : memref<64x64xbf16, #tpu.memory_space<vmem>>, vector<64x64xbf16>
    %cst_51 = arith.constant dense<0.000000e+00> : vector<8x64xf32>
    %148 = tpu.matmul %146, %147, %cst_51 {dimension_numbers = #tpu.dot_dimension_numbers<[1], [0], [0], [1], [0, 0, 1, 1], [], []>} : vector<8x64xbf16>, vector<64x64xbf16>, vector<8x64xf32> -> vector<8x64xf32>
    %149 = arith.subf %74, %148 : vector<8x64xf32>
    %150 = arith.mulf %149, %149 : vector<8x64xf32>
    %151 = vector.shape_cast %150 : vector<8x64xf32> to vector<1x8x64xf32>
    %cst_52 = arith.constant dense<0.000000e+00> : vector<1xf32>
    %152 = vector.multi_reduction <add>, %151, %cst_52 [1, 2] : vector<1x8x64xf32> to vector<1xf32>
    %153 = vector.shape_cast %152 : vector<1xf32> to vector<1x1x1xf32>
    %154 = vector.extract %153[0, 0, 0] : f32 from vector<1x1x1xf32>
    %155 = vector.broadcast %154 : f32 to vector<1x1xf32>
    %cst_53 = arith.constant 5.120000e+02 : f32
    %156 = vector.broadcast %cst_53 : f32 to vector<1x1xf32>
    %157 = arith.divf %155, %156 : vector<1x1xf32>
    %cst_54 = arith.constant dense<0.000000e+00> : vector<64xf32>
    %158 = vector.multi_reduction <add>, %74, %cst_54 [0] : vector<8x64xf32> to vector<64xf32>
    %159 = vector.shape_cast %158 : vector<64xf32> to vector<1x64xf32>
    %cst_55 = arith.constant 8.000000e+00 : f32
    %160 = vector.broadcast %cst_55 : f32 to vector<1x64xf32>
    %161 = arith.divf %159, %160 : vector<1x64xf32>
    %162 = vector.broadcast %161 : vector<1x64xf32> to vector<8x64xf32>
    %163 = arith.subf %74, %162 : vector<8x64xf32>
    %cst_56 = arith.constant dense<0.000000e+00> : vector<64xf32>
    %164 = vector.multi_reduction <add>, %148, %cst_56 [0] : vector<8x64xf32> to vector<64xf32>
    %165 = vector.shape_cast %164 : vector<64xf32> to vector<1x64xf32>
    %cst_57 = arith.constant 8.000000e+00 : f32
    %166 = vector.broadcast %cst_57 : f32 to vector<1x64xf32>
    %167 = arith.divf %165, %166 : vector<1x64xf32>
    %168 = vector.broadcast %167 : vector<1x64xf32> to vector<8x64xf32>
    %169 = arith.subf %148, %168 : vector<8x64xf32>
    %170 = arith.mulf %163, %163 : vector<8x64xf32>
    %cst_58 = arith.constant dense<0.000000e+00> : vector<64xf32>
    %171 = vector.multi_reduction <add>, %170, %cst_58 [0] : vector<8x64xf32> to vector<64xf32>
    %172 = vector.shape_cast %171 : vector<64xf32> to vector<1x64xf32>
    %cst_59 = arith.constant 7.000000e+00 : f32
    %173 = vector.broadcast %cst_59 : f32 to vector<1x64xf32>
    %174 = arith.divf %172, %173 : vector<1x64xf32>
    %175 = arith.mulf %169, %169 : vector<8x64xf32>
    %cst_60 = arith.constant dense<0.000000e+00> : vector<64xf32>
    %176 = vector.multi_reduction <add>, %175, %cst_60 [0] : vector<8x64xf32> to vector<64xf32>
    %177 = vector.shape_cast %176 : vector<64xf32> to vector<1x64xf32>
    %cst_61 = arith.constant 7.000000e+00 : f32
    %178 = vector.broadcast %cst_61 : f32 to vector<1x64xf32>
    %179 = arith.divf %177, %178 : vector<1x64xf32>
    %cst_62 = arith.constant 9.99999974E-5 : f32
    %180 = vector.broadcast %cst_62 : f32 to vector<1x64xf32>
    %181 = arith.addf %174, %180 : vector<1x64xf32>
    %182 = math.sqrt %181 : vector<1x64xf32>
    %cst_63 = arith.constant 9.99999974E-5 : f32
    %183 = vector.broadcast %cst_63 : f32 to vector<1x64xf32>
    %184 = arith.addf %179, %183 : vector<1x64xf32>
    %185 = math.sqrt %184 : vector<1x64xf32>
    %cst_64 = arith.constant 1.000000e+00 : f32
    %186 = vector.broadcast %cst_64 : f32 to vector<1x64xf32>
    %187 = arith.subf %186, %182 : vector<1x64xf32>
    %cst_65 = arith.constant 0.000000e+00 : f32
    %188 = vector.broadcast %cst_65 : f32 to vector<1x64xf32>
    %189 = arith.maximumf %187, %188 : vector<1x64xf32>
    %190 = vector.shape_cast %189 : vector<1x64xf32> to vector<1x1x64xf32>
    %cst_66 = arith.constant dense<0.000000e+00> : vector<1xf32>
    %191 = vector.multi_reduction <add>, %190, %cst_66 [1, 2] : vector<1x1x64xf32> to vector<1xf32>
    %192 = vector.shape_cast %191 : vector<1xf32> to vector<1x1x1xf32>
    %193 = vector.extract %192[0, 0, 0] : f32 from vector<1x1x1xf32>
    %194 = vector.broadcast %193 : f32 to vector<1x1xf32>
    %cst_67 = arith.constant 6.400000e+01 : f32
    %195 = vector.broadcast %cst_67 : f32 to vector<1x1xf32>
    %196 = arith.divf %194, %195 : vector<1x1xf32>
    %cst_68 = arith.constant 1.000000e+00 : f32
    %197 = vector.broadcast %cst_68 : f32 to vector<1x64xf32>
    %198 = arith.subf %197, %185 : vector<1x64xf32>
    %cst_69 = arith.constant 0.000000e+00 : f32
    %199 = vector.broadcast %cst_69 : f32 to vector<1x64xf32>
    %200 = arith.maximumf %198, %199 : vector<1x64xf32>
    %201 = vector.shape_cast %200 : vector<1x64xf32> to vector<1x1x64xf32>
    %cst_70 = arith.constant dense<0.000000e+00> : vector<1xf32>
    %202 = vector.multi_reduction <add>, %201, %cst_70 [1, 2] : vector<1x1x64xf32> to vector<1xf32>
    %203 = vector.shape_cast %202 : vector<1xf32> to vector<1x1x1xf32>
    %204 = vector.extract %203[0, 0, 0] : f32 from vector<1x1x1xf32>
    %205 = vector.broadcast %204 : f32 to vector<1x1xf32>
    %cst_71 = arith.constant 6.400000e+01 : f32
    %206 = vector.broadcast %cst_71 : f32 to vector<1x1xf32>
    %207 = arith.divf %205, %206 : vector<1x1xf32>
    %208 = arith.addf %196, %207 : vector<1x1xf32>
    %cst_72 = arith.constant 5.000000e-01 : f32
    %209 = vector.broadcast %cst_72 : f32 to vector<1x1xf32>
    %210 = arith.mulf %208, %209 : vector<1x1xf32>
    %cst_73 = arith.constant dense<0.000000e+00> : vector<64x64xf32>
    %211 = tpu.matmul %163, %163, %cst_73 {dimension_numbers = #tpu.dot_dimension_numbers<[0], [0], [1], [1], [0, 1, 1, 1], [], []>} : vector<8x64xf32>, vector<8x64xf32>, vector<64x64xf32> -> vector<64x64xf32>
    %cst_74 = arith.constant 7.000000e+00 : f32
    %212 = vector.broadcast %cst_74 : f32 to vector<64x64xf32>
    %213 = arith.divf %211, %212 : vector<64x64xf32>
    %cst_75 = arith.constant dense<0.000000e+00> : vector<64x64xf32>
    %214 = tpu.matmul %169, %169, %cst_75 {dimension_numbers = #tpu.dot_dimension_numbers<[0], [0], [1], [1], [0, 1, 1, 1], [], []>} : vector<8x64xf32>, vector<8x64xf32>, vector<64x64xf32> -> vector<64x64xf32>
    %cst_76 = arith.constant 7.000000e+00 : f32
    %215 = vector.broadcast %cst_76 : f32 to vector<64x64xf32>
    %216 = arith.divf %214, %215 : vector<64x64xf32>
    %217 = tpu.iota {dimensions = array<i32: 0>} : vector<64x64xi32>
    %218 = tpu.iota {dimensions = array<i32: 1>} : vector<64x64xi32>
    %219 = arith.cmpi ne, %217, %218 : vector<64x64xi32>
    %220 = arith.extui %219 : vector<64x64xi1> to vector<64x64xi32>
    %221 = arith.sitofp %220 : vector<64x64xi32> to vector<64x64xf32>
    %222 = arith.mulf %213, %213 : vector<64x64xf32>
    %223 = arith.mulf %222, %221 : vector<64x64xf32>
    %224 = vector.shape_cast %223 : vector<64x64xf32> to vector<1x64x64xf32>
    %cst_77 = arith.constant dense<0.000000e+00> : vector<1xf32>
    %225 = vector.multi_reduction <add>, %224, %cst_77 [1, 2] : vector<1x64x64xf32> to vector<1xf32>
    %226 = vector.shape_cast %225 : vector<1xf32> to vector<1x1x1xf32>
    %227 = vector.extract %226[0, 0, 0] : f32 from vector<1x1x1xf32>
    %228 = vector.broadcast %227 : f32 to vector<1x1xf32>
    %229 = arith.mulf %216, %216 : vector<64x64xf32>
    %230 = arith.mulf %229, %221 : vector<64x64xf32>
    %231 = vector.shape_cast %230 : vector<64x64xf32> to vector<1x64x64xf32>
    %cst_78 = arith.constant dense<0.000000e+00> : vector<1xf32>
    %232 = vector.multi_reduction <add>, %231, %cst_78 [1, 2] : vector<1x64x64xf32> to vector<1xf32>
    %233 = vector.shape_cast %232 : vector<1xf32> to vector<1x1x1xf32>
    %234 = vector.extract %233[0, 0, 0] : f32 from vector<1x1x1xf32>
    %235 = vector.broadcast %234 : f32 to vector<1x1xf32>
    %236 = arith.addf %228, %235 : vector<1x1xf32>
    %cst_79 = arith.constant 6.400000e+01 : f32
    %237 = vector.broadcast %cst_79 : f32 to vector<1x1xf32>
    %238 = arith.divf %236, %237 : vector<1x1xf32>
    %cst_80 = arith.constant 2.500000e+01 : f32
    %239 = vector.broadcast %cst_80 : f32 to vector<1x1xf32>
    %240 = arith.mulf %239, %157 : vector<1x1xf32>
    %cst_81 = arith.constant 2.500000e+01 : f32
    %241 = vector.broadcast %cst_81 : f32 to vector<1x1xf32>
    %242 = arith.mulf %241, %210 : vector<1x1xf32>
    %243 = arith.addf %240, %242 : vector<1x1xf32>
    %cst_82 = arith.constant 1.000000e+00 : f32
    %244 = vector.broadcast %cst_82 : f32 to vector<1x1xf32>
    %245 = arith.mulf %244, %238 : vector<1x1xf32>
    %246 = arith.addf %243, %245 : vector<1x1xf32>
    %247 = tpu.iota {dimensions = array<i32: 1>} : vector<1x4xi32>
    %c0_i32 = arith.constant 0 : i32
    %248 = vector.broadcast %c0_i32 : i32 to vector<1x4xi32>
    %249 = arith.cmpi eq, %247, %248 : vector<1x4xi32>
    %c1_i32 = arith.constant 1 : i32
    %250 = vector.broadcast %c1_i32 : i32 to vector<1x4xi32>
    %251 = arith.cmpi eq, %247, %250 : vector<1x4xi32>
    %c2_i32 = arith.constant 2 : i32
    %252 = vector.broadcast %c2_i32 : i32 to vector<1x4xi32>
    %253 = arith.cmpi eq, %247, %252 : vector<1x4xi32>
    %254 = vector.shape_cast %210 : vector<1x1xf32> to vector<1x1xf32>
    %255 = vector.broadcast %254 : vector<1x1xf32> to vector<1x4xf32>
    %256 = vector.shape_cast %238 : vector<1x1xf32> to vector<1x1xf32>
    %257 = vector.broadcast %256 : vector<1x1xf32> to vector<1x4xf32>
    %258 = arith.select %253, %255, %257 : vector<1x4xi1>, vector<1x4xf32>
    %259 = vector.shape_cast %157 : vector<1x1xf32> to vector<1x1xf32>
    %260 = vector.broadcast %259 : vector<1x1xf32> to vector<1x4xf32>
    %261 = arith.select %251, %260, %258 : vector<1x4xi1>, vector<1x4xf32>
    %262 = vector.shape_cast %246 : vector<1x1xf32> to vector<1x1xf32>
    %263 = vector.broadcast %262 : vector<1x1xf32> to vector<1x4xf32>
    %264 = arith.select %249, %263, %261 : vector<1x4xi1>, vector<1x4xf32>
    %c0_83 = arith.constant 0 : index
    %c0_84 = arith.constant 0 : index
    %265 = vector.load %arg7[%c0_83, %c0_84] : memref<1x4xf32, #tpu.memory_space<vmem>>, vector<1x4xf32>
    tpu.vector_store %arg7[%c0_83, %c0_84], %264 {strides = array<i32>} : memref<1x4xf32, #tpu.memory_space<vmem>>, vector<1x4xf32>,
    return
  }
}

</mosaic_0001>

<bundles_post_ra>
// kernel: vicreg_forward.1
= control target key start
LH: loop header
LB: loop body
LE: loop exit
PB: predicated region body
PF: predicated region fallthrough
CT: control target
= control target key end

     0   :  { %vm2512_vm0 = vmmov 0   ;;  %vm753_vm1 = vcmask 261120   ;;  %vm797_vm2 = vcmask 523264   ;;  %vm1523_vm3 = vcmask 64512   ;;  %s3301_s2 = inlined_call_operand.vmem [shape: bf16[1024,32], index: 2, kind: input, shape index: {}]   ;;  %s3302_s0 = inlined_call_operand.vmem [shape: bf16[8,1024], index: 0, kind: input, shape index: {}]   ;;  %s3303_s3 = inlined_call_operand.vmem [shape: bf16[32,64], index: 3, kind: input, shape index: {}]   ;;  %s3304_s4 = inlined_call_operand.vmem [shape: bf16[64,64], index: 4, kind: input, shape index: {}]   ;;  %s3305_s6 = inlined_call_operand.vmem [shape: f32[8,64], index: 6, kind: input, shape index: {}]   ;;  %s3306_s5 = inlined_call_operand.vmem [shape: bf16[64,64], index: 5, kind: input, shape index: {}]   ;;  %s3307_s1 = inlined_call_operand.vmem [shape: bf16[8,1024], index: 1, kind: input, shape index: {}]   ;;  %s3308_s7 = inlined_call_operand.vmem [shape: f32[1,4], index: 7, kind: output, shape index: {}]  }
   0x1   :  { %v2556_v0 = vld [vmem:[%s3301_s2 + $0x40] sm:$0xff]   ;;  %v2579_v4 = vld [vmem:[%s3301_s2 + $0x48] sm:$0xff]   ;;  %v2603_v8 = vld [vmem:[%s3301_s2 + $0x50] sm:$0xff]   ;;  %vm1461_vm6 = vcmask 516096  }
   0x2   :  { %v2561_v1 = vld [vmem:[%s3301_s2 + $0xc0] sm:$0xff]   ;;  %2085 = vmatprep.subr.bf16.mxu0 %v2556_v0  ;;  %v2585_v5 = vld [vmem:[%s3301_s2 + $0xc8] sm:$0xff]   ;;  %v2609_v9 = vld [vmem:[%s3301_s2 + $0xd0] sm:$0xff]  }
   0x3   :  { %v2567_v2 = vld [vmem:[%s3301_s2] sm:$0xff]   ;;  %2107 = vmatprep.subr.bf16.mxu1 %v2561_v1  ;;  %v2591_v6 = vld [vmem:[%s3301_s2 + $0x8] sm:$0xff]   ;;  %v2615_v10 = vld [vmem:[%s3301_s2 + $0x10] sm:$0xff]  }
   0x4   :  { %v2573_v3 = vld [vmem:[%s3301_s2 + $0x80] sm:$0xff]   ;;  %2086 = vmatpush3.bf16.msra.mxu0 %v2567_v2  ;;  %v2597_v7 = vld [vmem:[%s3301_s2 + $0x88] sm:$0xff]   ;;  %v2621_v11 = vld [vmem:[%s3301_s2 + $0x90] sm:$0xff]  }
   0x5   :  { %2108 = vmatpush3.bf16.msra.mxu1 %v2573_v3  ;;  %2087 = vmatprep.subr.bf16.mxu0 %v2579_v4  ;;  %v2627_v12 = vld [vmem:[%s3301_s2 + $0x58] sm:$0xff]   ;;  %v2651_v16 = vld [vmem:[%s3301_s2 + $0x60] sm:$0xff]   ;;  %v2675_v20 = vld [vmem:[%s3301_s2 + $0x68] sm:$0xff]  }
   0x6   :  { %2109 = vmatprep.subr.bf16.mxu1 %v2585_v5  ;;  %v2633_v13 = vld [vmem:[%s3301_s2 + $0xd8] sm:$0xff]   ;;  %v2657_v17 = vld [vmem:[%s3301_s2 + $0xe0] sm:$0xff]   ;;  %v2681_v21 = vld [vmem:[%s3301_s2 + $0xe8] sm:$0xff]  }
   0x7   :  { %v2639_v14 = vld [vmem:[%s3301_s2 + $0x18] sm:$0xff]   ;;  %3343 = vst [vmem:[#allocation3_spill] sm:$0xff] %v2657_v17  ;;  %v2663_v18 = vld [vmem:[%s3301_s2 + $0x20] sm:$0xff]   ;;  %3345 = vst [vmem:[#allocation5_spill] sm:$0xff] %v2681_v21 }
   0x8   :  { %2088 = vmatpush3.bf16.msra.mxu0 %v2591_v6  ;;  %v2645_v15 = vld [vmem:[%s3301_s2 + $0x98] sm:$0xff]   ;;  %v2669_v19 = vld [vmem:[%s3301_s2 + $0xa0] sm:$0xff]   ;;  %v2687_v22 = vld [vmem:[%s3301_s2 + $0x28] sm:$0xff]  }
   0x9   :  { %2110 = vmatpush3.bf16.msra.mxu1 %v2597_v7  ;;  %2089 = vmatprep.subr.bf16.mxu0 %v2603_v8  ;;  %3342 = vst [vmem:[#allocation2_spill] sm:$0xff] %v2645_v15  ;;  %3344 = vst [vmem:[#allocation4_spill] sm:$0xff] %v2669_v19  ;;  %v2693_v23 = vld [vmem:[%s3301_s2 + $0xa8] sm:$0xff]   ;;  %v2699_v24 = vld [vmem:[%s3301_s2 + $0x70] sm:$0xff]  }
   0xa   :  { %2111 = vmatprep.subr.bf16.mxu1 %v2609_v9  ;;  %3346 = vst [vmem:[#allocation6_spill] sm:$0xff] %v2693_v23  ;;  %v2705_v25 = vld [vmem:[%s3301_s2 + $0xf0] sm:$0xff]   ;;  %v2723_v28 = vld [vmem:[%s3301_s2 + $0x78] sm:$0xff]   ;;  %v28_v32 = vld [vmem:[%s3302_s0] sm:$0xff] }
   0xb   :  { %3347 = vst [vmem:[#allocation7_spill] sm:$0xff] %v2705_v25  ;;  %v2711_v26 = vld [vmem:[%s3301_s2 + $0x30] sm:$0xff]   ;;  %v2729_v29 = vld [vmem:[%s3301_s2 + $0xf8] sm:$0xff]   ;;  %v29_v33 = vld [vmem:[%s3302_s0 + $0x8] sm:$0xff]  ;;  %v1965_v34 = vcombine.low %v28_v32, %v28_v32  ;;  %v1966_v35 = vcombine.high %v28_v32, %v28_v32 }
   0xc   :  { %2090 = vmatpush3.bf16.msra.mxu0 %v2615_v10  ;;  %v2717_v27 = vld [vmem:[%s3301_s2 + $0xb0] sm:$0xff]   ;;  %3349 = vst [vmem:[#allocation9_spill] sm:$0xff] %v2729_v29  ;;  %v2735_v30 = vld [vmem:[%s3301_s2 + $0x38] sm:$0xff]   ;;  %v1967_v36 = vcombine.low %v29_v33, %v29_v33  ;;  %v1968_v37 = vcombine.high %v29_v33, %v29_v33  ;;  %v2754_v38 = vld [vmem:[%s3301_s2 + $0x140] sm:$0xff]  }
   0xd   :  { %2112 = vmatpush3.bf16.msra.mxu1 %v2621_v11  ;;  %2091 = vmatprep.subr.bf16.mxu0 %v2627_v12  ;;  %3348 = vst [vmem:[#allocation8_spill] sm:$0xff] %v2717_v27  ;;  %v2741_v31 = vld [vmem:[%s3301_s2 + $0xb8] sm:$0xff]   ;;  %v2759_v39 = vld [vmem:[%s3301_s2 + $0x1c0] sm:$0xff]   ;;  %v2776_v42 = vld [vmem:[%s3301_s2 + $0x148] sm:$0xff]  }
   0xe   :  { %2113 = vmatprep.subr.bf16.mxu1 %v2633_v13  ;;  %3350 = vst [vmem:[#allocation10_spill] sm:$0xff] %v2741_v31  ;;  %3351 = vst [vmem:[#allocation11_spill] sm:$0xff] %v2759_v39  ;;  %604 = vmatprep.mubr.bf16.mxu0 %v1966_v35  ;;  %v2764_v40 = vld [vmem:[%s3301_s2 + $0x100] sm:$0xff]   ;;  %v2783_v43 = vld [vmem:[%s3301_s2 + $0x1c8] sm:$0xff]  }
   0xf   :  { %644 = vmatprep.mubr.bf16.mxu1 %v1968_v37  ;;  %v2769_v41 = vld [vmem:[%s3301_s2 + $0x180] sm:$0xff]   ;;  %3353 = vst [vmem:[#allocation13_spill] sm:$0xff] %v2783_v43  ;;  %v2789_v44 = vld [vmem:[%s3301_s2 + $0x108] sm:$0xff]   ;;  %v2800_v46 = vld [vmem:[%s3301_s2 + $0x150] sm:$0xff]  }
  0x10   :  { %2092 = vmatpush3.bf16.msra.mxu0 %v2639_v14  ;;  %3352 = vst [vmem:[#allocation12_spill] sm:$0xff] %v2769_v41  ;;  %v2795_v45 = vld [vmem:[%s3301_s2 + $0x188] sm:$0xff]   ;;  %v2807_v47 = vld [vmem:[%s3301_s2 + $0x1d0] sm:$0xff]   ;;  %v2824_v50 = vld [vmem:[%s3301_s2 + $0x158] sm:$0xff]  }
  0x11   :  { %2114 = vmatpush3.bf16.msra.mxu1 %v2645_v15  ;;  %2093 = vmatprep.subr.bf16.mxu0 %v2651_v16  ;;  %3354 = vst [vmem:[#allocation14_spill] sm:$0xff] %v2795_v45  ;;  %3355 = vst [vmem:[#allocation15_spill] sm:$0xff] %v2807_v47  ;;  %v2813_v48 = vld [vmem:[%s3301_s2 + $0x110] sm:$0xff]   ;;  %v2831_v51 = vld [vmem:[%s3301_s2 + $0x1d8] sm:$0xff]  }
  0x12   :  { %2115 = vmatprep.subr.bf16.mxu1 %v2657_v17  ;;  %v2819_v49 = vld [vmem:[%s3301_s2 + $0x190] sm:$0xff]   ;;  %3357 = vst [vmem:[#allocation17_spill] sm:$0xff] %v2831_v51  ;;  %v2837_v52 = vld [vmem:[%s3301_s2 + $0x118] sm:$0xff]   ;;  %v2848_v54 = vld [vmem:[%s3301_s2 + $0x160] sm:$0xff]  }
  0x13   :  { %3356 = vst [vmem:[#allocation16_spill] sm:$0xff] %v2819_v49  ;;  %v2843_v53 = vld [vmem:[%s3301_s2 + $0x198] sm:$0xff]   ;;  %v2855_v55 = vld [vmem:[%s3301_s2 + $0x1e0] sm:$0xff]   ;;  %v2872_v58 = vld [vmem:[%s3301_s2 + $0x168] sm:$0xff]  }
  0x14   :  { %2094 = vmatpush3.bf16.msra.mxu0 %v2663_v18  ;;  %3358 = vst [vmem:[#allocation18_spill] sm:$0xff] %v2843_v53  ;;  %3359 = vst [vmem:[#allocation19_spill] sm:$0xff] %v2855_v55  ;;  %v2861_v56 = vld [vmem:[%s3301_s2 + $0x120] sm:$0xff]   ;;  %v2879_v59 = vld [vmem:[%s3301_s2 + $0x1e8] sm:$0xff]  }
  0x15   :  { %2116 = vmatpush3.bf16.msra.mxu1 %v2669_v19  ;;  %2095 = vmatprep.subr.bf16.mxu0 %v2675_v20  ;;  %v2867_v57 = vld [vmem:[%s3301_s2 + $0x1a0] sm:$0xff]   ;;  %3361 = vst [vmem:[#allocation21_spill] sm:$0xff] %v2879_v59  ;;  %v2885_v60 = vld [vmem:[%s3301_s2 + $0x128] sm:$0xff]   ;;  %v2896_v62 = vld [vmem:[%s3301_s2 + $0x170] sm:$0xff]  }
  0x16   :  { %2117 = vmatprep.subr.bf16.mxu1 %v2681_v21  ;;  %3360 = vst [vmem:[#allocation20_spill] sm:$0xff] %v2867_v57  ;;  %v2891_v61 = vld [vmem:[%s3301_s2 + $0x1a8] sm:$0xff]   ;;  %v2903_v63 = vld [vmem:[%s3301_s2 + $0x1f0] sm:$0xff]   ;;  %v2927_v35 = vld [vmem:[%s3301_s2 + $0x1f8] sm:$0xff]  }
  0x17   :  { %3362 = vst [vmem:[#allocation22_spill] sm:$0xff] %v2891_v61  ;;  %3363 = vst [vmem:[#allocation23_spill] sm:$0xff] %v2903_v63  ;;  %v2909_v32 = vld [vmem:[%s3301_s2 + $0x130] sm:$0xff]   ;;  %v2939_v37 = vld [vmem:[%s3301_s2 + $0x1b8] sm:$0xff]  }
  0x18   :  { %2096 = vmatpush3.bf16.msra.mxu0 %v2687_v22  ;;  %v2915_v33 = vld [vmem:[%s3301_s2 + $0x1b0] sm:$0xff]   ;;  %3365 = vst [vmem:[#allocation25_spill] sm:$0xff] %v2927_v35  ;;  %3366 = vst [vmem:[#allocation26_spill] sm:$0xff] %v2939_v37 }
  0x19   :  { %2118 = vmatpush3.bf16.msra.mxu1 %v2693_v23  ;;  %2097 = vmatprep.subr.bf16.mxu0 %v2699_v24  ;;  %3364 = vst [vmem:[#allocation24_spill] sm:$0xff] %v2915_v33 }
  0x1a   :  { %2119 = vmatprep.subr.bf16.mxu1 %v2705_v25 }
  0x1c   :  { %2098 = vmatpush3.bf16.msra.mxu0 %v2711_v26 }
  0x1d   :  { %2120 = vmatpush3.bf16.msra.mxu1 %v2717_v27  ;;  %2099 = vmatprep.subr.bf16.mxu0 %v2723_v28 }
  0x1e   :  { %2121 = vmatprep.subr.bf16.mxu1 %v2729_v29 }
  0x20   :  { %2100 = vmatpush3.bf16.msra.mxu0 %v2735_v30 }
  0x21   :  { %2122 = vmatpush3.bf16.msra.mxu1 %v2741_v31  ;;  %2129 = vmatprep.subr.bf16.mxu0 %v2754_v38 }
  0x22   :  { %2151 = vmatprep.subr.bf16.mxu1 %v2759_v39 }
  0x23   :  { %605 = vmatmul.mubr.bf16.vlgmr.msra.gmra.mrb[0].mxu0 %v1965_v34  ;;  %v2920_v34 = vld [vmem:[%s3301_s2 + $0x178] sm:$0xff]  }
  0x24   :  { %645 = vmatmul.mubr.bf16.vlgmr.msra.gmra.mrb[0].mxu1 %v1967_v36  ;;  %2130 = vmatpush3.bf16.msra.mxu0 %v2764_v40  ;;  %v2933_v36 = vld [vmem:[%s3301_s2 + $0x138] sm:$0xff]  }
  0x25   :  { %2152 = vmatpush3.bf16.msra.mxu1 %v2769_v41  ;;  %2131 = vmatprep.subr.bf16.mxu0 %v2776_v42 }
  0x26   :  { %2153 = vmatprep.subr.bf16.mxu1 %v2783_v43 }
  0x28   :  { %2132 = vmatpush3.bf16.msra.mxu0 %v2789_v44 }
  0x29   :  { %2154 = vmatpush3.bf16.msra.mxu1 %v2795_v45  ;;  %2133 = vmatprep.subr.bf16.mxu0 %v2800_v46 }
  0x2a   :  { %2155 = vmatprep.subr.bf16.mxu1 %v2807_v47 }
  0x2c   :  { %2134 = vmatpush3.bf16.msra.mxu0 %v2813_v48 }
  0x2d   :  { %2156 = vmatpush3.bf16.msra.mxu1 %v2819_v49  ;;  %2135 = vmatprep.subr.bf16.mxu0 %v2824_v50 }
  0x2e   :  { %2157 = vmatprep.subr.bf16.mxu1 %v2831_v51 }
  0x30   :  { %2136 = vmatpush3.bf16.msra.mxu0 %v2837_v52 }
  0x31   :  { %2158 = vmatpush3.bf16.msra.mxu1 %v2843_v53  ;;  %2137 = vmatprep.subr.bf16.mxu0 %v2848_v54 }
  0x32   :  { %2159 = vmatprep.subr.bf16.mxu1 %v2855_v55  ;;  %v2952_v55 = vld [vmem:[%s3303_s3] sm:$0xff]  }
  0x34   :  { %2138 = vmatpush3.bf16.msra.mxu0 %v2861_v56 }
  0x35   :  { %2160 = vmatpush3.bf16.msra.mxu1 %v2867_v57  ;;  %2139 = vmatprep.subr.bf16.mxu0 %v2872_v58 }
  0x36   :  { %2161 = vmatprep.subr.bf16.mxu1 %v2879_v59  ;;  %v31_v59 = vld [vmem:[%s3302_s0 + $0x18] sm:$0xff] }
  0x37   :  { %v1972_v57 = vcombine.high %v31_v59, %v31_v59 }
  0x38   :  { %2140 = vmatpush3.bf16.msra.mxu0 %v2885_v60 }
  0x39   :  { %2162 = vmatpush3.bf16.msra.mxu1 %v2891_v61  ;;  %2141 = vmatprep.subr.bf16.mxu0 %v2896_v62 }
  0x3a   :  { %2163 = vmatprep.subr.bf16.mxu1 %v2903_v63  ;;  %724 = vmatprep.mubr.bf16.mxu1 %v1972_v57  ;;  %v2961_v57 = vld [vmem:[%s3303_s3 + $0x8] sm:$0xff]  }
  0x3c   :  { %2142 = vmatpush3.bf16.msra.mxu0 %v2909_v32 }
  0x3d   :  { %2164 = vmatpush3.bf16.msra.mxu1 %v2915_v33  ;;  %2143 = vmatprep.subr.bf16.mxu0 %v2920_v34  ;;  %v30_v33 = vld [vmem:[%s3302_s0 + $0x10] sm:$0xff] }
  0x3e   :  { %2165 = vmatprep.subr.bf16.mxu1 %v2927_v35  ;;  %v1969_v63 = vcombine.low %v30_v33, %v30_v33  ;;  %v1970_v61 = vcombine.high %v30_v33, %v30_v33  ;;  %v1971_v35 = vcombine.low %v31_v59, %v31_v59  ;;  %v3331_v33 = vmov 0.0  }
  0x40   :  { %2144 = vmatpush3.bf16.msra.mxu0 %v2933_v36  ;;  %684 = vmatprep.mubr.bf16.mxu0 %v1970_v61 }
  0x41   :  { %2166 = vmatpush3.bf16.msra.mxu1 %v2939_v37  ;;  %2305 = vmatprep.subr.bf16.mxu0 %v3331_v33 }
  0x42   :  { %2313 = vmatprep.subr.bf16.mxu1 %v3331_v33 }
  0x43   :  { %685 = vmatmul.mubr.bf16.vlgmr.msra.gmra.mrb[4].mxu0 %v1969_v63 }
  0x44   :  { %725 = vmatmul.mubr.bf16.vlgmr.msra.gmra.mrb[4].mxu1 %v1971_v35  ;;  %2306 = vmatpush3.bf16.msra.mxu0 %v2952_v55 }
  0x45   :  { %2307 = vmatprep.subr.bf16.mxu0 %v3331_v33  ;;  %2309 = vmatprep.mubr.msk.bf16.mxu0 %vm2512_vm0, %v3331_v33 }
  0x46   :  { %2321 = vmatprep.mubr.msk.bf16.mxu1 %vm2512_vm0, %v3331_v33 }
  0x48   :  { %2308 = vmatpush3.bf16.msra.mxu0 %v2961_v57 }
  0x49   :  { %2325 = vmatprep.subr.bf16.mxu0 %v3331_v33 }
  0xf6   :  { %v2101_v59 = vpop.f32.mrb[0].mxu0 }
  0xf7   :  { %v2123_v61 = vpop.f32.mrb[0].mxu1  ;;  %v2102_v63 = vpop.f32.mrb[1].mxu0 }
  0xf8   :  { %v2124_v35 = vpop.f32.mrb[1].mxu1  ;;  %v2103_v37 = vadd.f32 %v2102_v63, %v2101_v59  ;;  %v2104_v51 = vpop.f32.mrb[2].mxu0 }
  0xf9   :  { %v2125_v53 = vadd.f32 %v2124_v35, %v2123_v61  ;;  %v2126_v49 = vpop.f32.mrb[2].mxu1  ;;  %v2105_v47 = vpop.f32.mrb[3].mxu0 }
  0xfa   :  { %v2127_v45 = vpop.f32.mrb[3].mxu1  ;;  %v3367_v49 = vmov 0.0  }
  0xfb   :  { %v647_v43 = vadd.f32 %v2125_v53, %v2103_v37  ;;  %v2975_v45 = vld [vmem:[%s3304_s4] sm:$0xff]  }
  0xfc   :  { %3368 = vst [vmem:[#allocation27_spill] sm:$0xff] %v2975_v45  ;;  %2314 = vmatpush3.bf16.msra.mxu1 %v2975_v45 }
  0xfd   :  { %2315 = vmatprep.subr.bf16.mxu1 %v3367_v49 }
 0x116   :  { %v2145_v41 = vpop.f32.mrb[4].mxu0 }
 0x117   :  { %v2167_v39 = vpop.f32.mrb[4].mxu1  ;;  %v2146_v31 = vpop.f32.mrb[5].mxu0 }
 0x118   :  { %v2168_v29 = vpop.f32.mrb[5].mxu1  ;;  %v2147_v27 = vadd.f32 %v2146_v31, %v2145_v41  ;;  %v2148_v23 = vpop.f32.mrb[6].mxu0 }
 0x119   :  { %v2169_v25 = vadd.f32 %v2168_v29, %v2167_v39  ;;  %v2170_v21 = vpop.f32.mrb[6].mxu1  ;;  %v2149_v33 = vpop.f32.mrb[7].mxu0 }
 0x11a   :  { %v2171_v19 = vpop.f32.mrb[7].mxu1  ;;  %v687_v17 = vadd.f32 %v2147_v27, %v647_v43  ;;  %v3336_v21 = vlaneseq  ;;  %v3007_v27 = vld [vmem:[%s3305_s6] sm:$0xff] }
 0x11b   :  { %v2996_v19 = vld [vmem:[%s3304_s4 + $0x18] sm:$0xff]  }
 0x11c   :  { %v727_v15 = vadd.f32 %v2169_v25, %v687_v17  ;;  %v2982_v17 = vld [vmem:[%s3304_s4 + $0x8] sm:$0xff]   ;;  %3371 = vst [vmem:[#allocation30_spill] sm:$0xff] %v2996_v19  ;;  %v3001_v23 = vshrl.u32 %v3336_v21, 7 }
 0x11d   :  { %3369 = vst [vmem:[#allocation28_spill] sm:$0xff] %v2982_v17  ;;  %2316 = vmatpush3.bf16.msra.mxu1 %v2982_v17 }
 0x11e   :  { %v732_v59 = vpack.c.bf16 %v727_v15, %v727_v15  ;;  %2317 = vmatprep.subr.bf16.mxu1 %v3367_v49  ;;  %v2989_v15 = vld [vmem:[%s3304_s4 + $0x10] sm:$0xff]   ;;  %v739_v25 = vsub.s32 0, %v3001_v23 }
 0x11f   :  { %3370 = vst [vmem:[#allocation29_spill] sm:$0xff] %v2989_v15 }
 0x120   :  { %2310 = vmatmul.mubr.msk.bf16.vlgmr.msra.gmra.mrb[8].mxu0 %vm753_vm1, %v732_v59  ;;  %v3010_v29 = vrot.slane %v3007_v27, %v739_v25 }
 0x121   :  { %2333 = vmatprep.mubr.msk.bf16.mxu0 %vm2512_vm0, %v3367_v49  ;;  %2318 = vmatpush3.bf16.msra.mxu1 %v2989_v15 }
 0x122   :  { %2319 = vmatprep.subr.bf16.mxu1 %v3367_v49  ;;  %3372 = vst [vmem:[#allocation31_spill] sm:$0xff] %v3010_v29 }
 0x125   :  { %2320 = vmatpush3.bf16.msra.mxu1 %v2996_v19 }
 0x126   :  { %2186 = vmatprep.subr.bf16.mxu1 %v2556_v0 }
 0x1f3   :  { %v791_v31 = vpop.f32.mrb[8].mxu0 }
 0x1f4   :  { %v792_v39 = vadd.f32 %v791_v31, %v3010_v29  ;;  %v2311_v41 = vpop.f32.mrb[9].mxu0 }
 0x1f5   :  { %v794_v0 = vpop.f32.mrb[10].mxu0 }
 0x1f6   :  { %v798_v43 = vsel %vm797_vm2, %v792_v39, 0.0  ;;  %v2312_v47 = vpop.f32.mrb[11].mxu0 }
 0x1f7   :  { %v799_v51 = vrot.slane %v798_v43, 4  ;;  %v827_v47 = vsub.s32 2, %v3001_v23 }
 0x1f9   :  { %v800_v53 = vadd.f32 %v799_v51, %v798_v43  ;;  %v822_v43 = vsub.s32 1, %v3001_v23 }
 0x1fb   :  { %v801_v37 = vrot.slane %v800_v53, 2  ;;  %v3018_v51 = vrot.slane %v3007_v27, %v822_v43 }
 0x1fd   :  { %v802_v33 = vadd.f32 %v801_v37, %v800_v53 }
 0x1ff   :  { %v803_v61 = vrot.slane %v802_v33, 1 }
 0x201   :  { %v804_v63 = vadd.f32 %v803_v61, %v802_v33  ;;  %v934_v33 = vsub.s32 4, %v3001_v23  ;;  %v939_v61 = vsub.s32 5, %v3001_v23 }
 0x203   :  { %v806_v35 = vmul.f32 0.125, %v804_v63  ;;  %v3108_v63 = vrot.slane %v3007_v27, %v934_v33 }
 0x205   :  { %v807_v59 = vsub.f32 %v792_v39, %v806_v35 }
 0x207   :  { %v808_v21 = vmul.f32 %v807_v59, %v807_v59 }
 0x209   :  { %v809_v25 = vsel %vm797_vm2, %v808_v21, 0.0  ;;  %v3021_v21 = vrot.slane %v3007_v27, %v827_v47 }
 0x20a   :  { %v810_v19 = vrot.slane %v809_v25, 4 }
 0x20c   :  { %v811_v15 = vadd.f32 %v810_v19, %v809_v25  ;;  %v3111_v25 = vrot.slane %v3007_v27, %v939_v61 }
 0x20e   :  { %v812_v17 = vrot.slane %v811_v15, 2 }
 0x210   :  { %v813_v31 = vadd.f32 %v812_v17, %v811_v15 }
 0x212   :  { %v814_v41 = vrot.slane %v813_v31, 1 }
 0x214   :  { %v815_v0 = vadd.f32 %v814_v41, %v813_v31 }
 0x216   :  { %v816_v29 = vmul.f32 0.125, %v815_v0  ;;  %v1020_v0 = vld [vmem:[%s3307_s1 + $0x8] sm:$0xff] }
 0x217   :  { %v2053_v47 = vcombine.high %v1020_v0, %v1020_v0 }
 0x218   :  { %v817_v45 = vadd.f32 1e-05, %v816_v29 }
 0x21a   :  { %2499 = vrsqrt.f32 %v817_v45 }
 0x224   :  { %v2500_v39 = vpop.eup %2499 }
 0x225   :  { %v819_v53 = vmul.f32 %v2500_v39, %v807_v59 }
 0x227   :  { %v824_v19 = vmul.f32 %v3018_v51, %v819_v53  ;;  %v3374_v53 = vld [vmem:[#allocation3_spill] sm:$0xff] }
 0x229   :  { %v829_v17 = vadd.f32 %v3021_v21, %v824_v19  ;;  %v3375_v19 = vld [vmem:[#allocation4_spill] sm:$0xff] }
 0x22b   :  { %v830_v15 = vmax.f32 %v829_v17, 0.0  ;;  %v3376_v17 = vld [vmem:[#allocation5_spill] sm:$0xff] }
 0x22d   :  { %v831_v37 = vpack.c.bf16 %v830_v15, %v830_v15  ;;  %v3378_v15 = vld [vmem:[#allocation7_spill] sm:$0xff] }
 0x22f   :  { %2322 = vmatmul.mubr.msk.bf16.vlgmr.msra.gmra.mrb[8].mxu1 %vm797_vm2, %v831_v37 }
 0x230   :  { %2187 = vmatpush3.bf16.msra.mxu1 %v2567_v2  ;;  %v3045_v2 = vld [vmem:[%s3306_s5] sm:$0xff]  }
 0x231   :  { %2188 = vmatprep.subr.bf16.mxu1 %v2579_v4  ;;  %2326 = vmatpush3.bf16.msra.mxu0 %v3045_v2  ;;  %v3052_v4 = vld [vmem:[%s3306_s5 + $0x8] sm:$0xff]  }
 0x232   :  { %2327 = vmatprep.subr.bf16.mxu0 %v3367_v49 }
 0x234   :  { %2189 = vmatpush3.bf16.msra.mxu1 %v2591_v6  ;;  %v3059_v6 = vld [vmem:[%s3306_s5 + $0x10] sm:$0xff]  }
 0x235   :  { %2190 = vmatprep.subr.bf16.mxu1 %v2603_v8  ;;  %2328 = vmatpush3.bf16.msra.mxu0 %v3052_v4  ;;  %v3066_v8 = vld [vmem:[%s3306_s5 + $0x18] sm:$0xff]  }
 0x236   :  { %2329 = vmatprep.subr.bf16.mxu0 %v3367_v49 }
 0x238   :  { %2191 = vmatpush3.bf16.msra.mxu1 %v2615_v10  ;;  %v1019_v10 = vld [vmem:[%s3307_s1] sm:$0xff] }
 0x239   :  { %2192 = vmatprep.subr.bf16.mxu1 %v2627_v12  ;;  %2330 = vmatpush3.bf16.msra.mxu0 %v3059_v6  ;;  %v2051_v12 = vcombine.high %v1019_v10, %v1019_v10 }
 0x23a   :  { %2331 = vmatprep.subr.bf16.mxu0 %v3367_v49 }
 0x23b   :  { %1083 = vmatprep.mubr.bf16.mxu1 %v2051_v12  ;;  %v3383_v12 = vld [vmem:[#allocation12_spill] sm:$0xff] }
 0x23c   :  { %2193 = vmatpush3.bf16.msra.mxu1 %v2639_v14  ;;  %v2050_v14 = vcombine.low %v1019_v10, %v1019_v10  ;;  %v3382_v10 = vld [vmem:[#allocation11_spill] sm:$0xff] }
 0x23d   :  { %2194 = vmatprep.subr.bf16.mxu1 %v2651_v16  ;;  %2332 = vmatpush3.bf16.msra.mxu0 %v3066_v8 }
 0x23e   :  { %2208 = vmatprep.subr.bf16.mxu0 %v2561_v1  ;;  %v1021_v1 = vld [vmem:[%s3307_s1 + $0x10] sm:$0xff] }
 0x23f   :  { %v2055_v16 = vcombine.high %v1021_v1, %v1021_v1 }
 0x240   :  { %2195 = vmatpush3.bf16.msra.mxu1 %v2663_v18  ;;  %v2054_v18 = vcombine.low %v1021_v1, %v1021_v1  ;;  %v3385_v1 = vld [vmem:[#allocation14_spill] sm:$0xff] }
 0x241   :  { %2196 = vmatprep.subr.bf16.mxu1 %v2675_v20  ;;  %v842_v20 = vsub.s32 3, %v3001_v23 }
 0x244   :  { %2197 = vmatpush3.bf16.msra.mxu1 %v2687_v22  ;;  %v3100_v22 = vrot.slane %v3007_v27, %v842_v20  ;;  %v3373_v27 = vld [vmem:[#allocation2_spill] sm:$0xff]  ;;  %v3388_v20 = vld [vmem:[#allocation17_spill] sm:$0xff] }
 0x245   :  { %2198 = vmatprep.subr.bf16.mxu1 %v2699_v24 }
 0x248   :  { %2199 = vmatpush3.bf16.msra.mxu1 %v2711_v26 }
 0x249   :  { %2200 = vmatprep.subr.bf16.mxu1 %v2723_v28 }
 0x24c   :  { %2201 = vmatpush3.bf16.msra.mxu1 %v2735_v30 }
 0x24d   :  { %2230 = vmatprep.subr.bf16.mxu1 %v2754_v38 }
 0x24f   :  { %1084 = vmatmul.mubr.bf16.vlgmr.msra.gmra.mrb[12].mxu1 %v2050_v14  ;;  %v3384_v14 = vld [vmem:[#allocation13_spill] sm:$0xff] }
 0x250   :  { %2231 = vmatpush3.bf16.msra.mxu1 %v2764_v40  ;;  %1163 = vmatprep.mubr.bf16.mxu1 %v2055_v16  ;;  %v3386_v16 = vld [vmem:[#allocation15_spill] sm:$0xff] }
 0x251   :  { %2232 = vmatprep.subr.bf16.mxu1 %v2776_v42 }
 0x254   :  { %2233 = vmatpush3.bf16.msra.mxu1 %v2789_v44 }
 0x255   :  { %2234 = vmatprep.subr.bf16.mxu1 %v2800_v46 }
 0x258   :  { %2235 = vmatpush3.bf16.msra.mxu1 %v2813_v48 }
 0x259   :  { %2236 = vmatprep.subr.bf16.mxu1 %v2824_v50 }
 0x25c   :  { %2237 = vmatpush3.bf16.msra.mxu1 %v2837_v52 }
 0x25d   :  { %2238 = vmatprep.subr.bf16.mxu1 %v2848_v54 }
 0x260   :  { %2239 = vmatpush3.bf16.msra.mxu1 %v2861_v56 }
 0x261   :  { %2240 = vmatprep.subr.bf16.mxu1 %v2872_v58 }
 0x264   :  { %2241 = vmatpush3.bf16.msra.mxu1 %v2885_v60 }
 0x265   :  { %2242 = vmatprep.subr.bf16.mxu1 %v2896_v62 }
 0x268   :  { %2243 = vmatpush3.bf16.msra.mxu1 %v2909_v32 }
 0x269   :  { %2244 = vmatprep.subr.bf16.mxu1 %v2920_v34 }
 0x26c   :  { %2245 = vmatpush3.bf16.msra.mxu1 %v2933_v36 }
 0x26d   :  { %2337 = vmatprep.subr.bf16.mxu1 %v3367_v49 }
 0x26f   :  { %1164 = vmatmul.mubr.bf16.vlgmr.msra.gmra.mrb[16].mxu1 %v2054_v18  ;;  %v3387_v18 = vld [vmem:[#allocation16_spill] sm:$0xff] }
 0x270   :  { %2338 = vmatpush3.bf16.msra.mxu1 %v2952_v55  ;;  %2341 = vmatprep.mubr.msk.bf16.mxu1 %vm2512_vm0, %v3367_v49 }
 0x271   :  { %2339 = vmatprep.subr.bf16.mxu1 %v3367_v49 }
 0x274   :  { %2340 = vmatpush3.bf16.msra.mxu1 %v2961_v57 }
 0x275   :  { %2357 = vmatprep.subr.bf16.mxu1 %v3367_v49 }
 0x302   :  { %v905_v24 = vpop.f32.mrb[8].mxu1 }
 0x303   :  { %v906_v26 = vadd.f32 %v905_v24, %v3100_v22  ;;  %v2323_v28 = vpop.f32.mrb[9].mxu1  ;;  %v3389_v24 = vld [vmem:[#allocation18_spill] sm:$0xff] }
 0x304   :  { %v908_v30 = vpop.f32.mrb[10].mxu1  ;;  %v3391_v28 = vld [vmem:[#allocation20_spill] sm:$0xff] }
 0x305   :  { %v911_v38 = vsel %vm797_vm2, %v906_v26, 0.0  ;;  %v2324_v40 = vpop.f32.mrb[11].mxu1  ;;  %v3392_v30 = vld [vmem:[#allocation21_spill] sm:$0xff] }
 0x306   :  { %v912_v42 = vrot.slane %v911_v38, 4  ;;  %v3394_v40 = vld [vmem:[#allocation23_spill] sm:$0xff] }
 0x308   :  { %v913_v44 = vadd.f32 %v912_v42, %v911_v38  ;;  %v3393_v38 = vld [vmem:[#allocation22_spill] sm:$0xff]  ;;  %v3395_v42 = vld [vmem:[#allocation24_spill] sm:$0xff] }
 0x30a   :  { %v914_v46 = vrot.slane %v913_v44, 2 }
 0x30c   :  { %v915_v48 = vadd.f32 %v914_v46, %v913_v44  ;;  %v3396_v44 = vld [vmem:[#allocation25_spill] sm:$0xff] }
 0x30e   :  { %v916_v50 = vrot.slane %v915_v48, 1 }
 0x310   :  { %v917_v52 = vadd.f32 %v916_v50, %v915_v48  ;;  %v3397_v48 = vld [vmem:[#allocation26_spill] sm:$0xff]  ;;  %v3398_v50 = vld [vmem:[#allocation27_spill] sm:$0xff] }
 0x312   :  { %v918_v54 = vmul.f32 0.125, %v917_v52  ;;  %v3399_v52 = vld [vmem:[#allocation28_spill] sm:$0xff] }
 0x314   :  { %v919_v55 = vsub.f32 %v906_v26, %v918_v54  ;;  %v3390_v26 = vld [vmem:[#allocation19_spill] sm:$0xff]  ;;  %v3400_v54 = vld [vmem:[#allocation29_spill] sm:$0xff] }
 0x316   :  { %v920_v56 = vmul.f32 %v919_v55, %v919_v55 }
 0x318   :  { %v921_v58 = vsel %vm797_vm2, %v920_v56, 0.0 }
 0x319   :  { %v922_v60 = vrot.slane %v921_v58, 4 }
 0x31b   :  { %v923_v62 = vadd.f32 %v922_v60, %v921_v58 }
 0x31d   :  { %v924_v32 = vrot.slane %v923_v62, 2 }
 0x31f   :  { %v925_v34 = vadd.f32 %v924_v32, %v923_v62 }
 0x321   :  { %v926_v36 = vrot.slane %v925_v34, 1 }
 0x322   :  { %v2202_v56 = vpop.f32.mrb[12].mxu1 }
 0x323   :  { %v927_v57 = vadd.f32 %v926_v36, %v925_v34  ;;  %v2203_v58 = vpop.f32.mrb[13].mxu1 }
 0x324   :  { %v2205_v60 = vpop.f32.mrb[14].mxu1  ;;  %v2204_v32 = vadd.f32 %v2203_v58, %v2202_v56 }
 0x325   :  { %v928_v45 = vmul.f32 0.125, %v927_v57  ;;  %v2206_v62 = vpop.f32.mrb[15].mxu1 }
 0x327   :  { %v929_v29 = vadd.f32 1e-05, %v928_v45 }
 0x329   :  { %2501 = vrsqrt.f32 %v929_v29 }
 0x333   :  { %v2502_v35 = vpop.eup %2501 }
 0x334   :  { %v931_v59 = vmul.f32 %v2502_v35, %v919_v55  ;;  %v3401_v55 = vld [vmem:[#allocation30_spill] sm:$0xff] }
 0x336   :  { %v936_v31 = vmul.f32 %v3108_v63, %v931_v59 }
 0x338   :  { %v941_v41 = vadd.f32 %v3111_v25, %v936_v31 }
 0x33a   :  { %v942_v43 = vmax.f32 %v941_v41, 0.0 }
 0x33c   :  { %v943_v39 = vpack.c.bf16 %v942_v43, %v942_v43 }
 0x33e   :  { %2334 = vmatmul.mubr.msk.bf16.vlgmr.msra.gmra.mrb[12].mxu0 %vm797_vm2, %v943_v39 }
 0x33f   :  { %2209 = vmatpush3.bf16.msra.mxu0 %v2573_v3  ;;  %1123 = vmatprep.mubr.bf16.mxu0 %v2053_v47  ;;  %v3377_v3 = vld [vmem:[#allocation6_spill] sm:$0xff] }
 0x340   :  { %2210 = vmatprep.subr.bf16.mxu0 %v2585_v5  ;;  %v3379_v5 = vld [vmem:[#allocation8_spill] sm:$0xff] }
 0x342   :  { %v2246_v34 = vpop.f32.mrb[16].mxu1 }
 0x343   :  { %2211 = vmatpush3.bf16.msra.mxu0 %v2597_v7  ;;  %v3380_v7 = vld [vmem:[#allocation9_spill] sm:$0xff]  ;;  %v2247_v36 = vpop.f32.mrb[17].mxu1 }
 0x344   :  { %2212 = vmatprep.subr.bf16.mxu0 %v2609_v9  ;;  %v1022_v9 = vld [vmem:[%s3307_s1 + $0x18] sm:$0xff]  ;;  %v2248_v57 = vadd.f32 %v2247_v36, %v2246_v34  ;;  %v2249_v45 = vpop.f32.mrb[18].mxu1 }
 0x345   :  { %v2057_v37 = vcombine.high %v1022_v9, %v1022_v9  ;;  %v2056_v46 = vcombine.low %v1022_v9, %v1022_v9  ;;  %v2250_v29 = vpop.f32.mrb[19].mxu1 }
 0x347   :  { %2213 = vmatpush3.bf16.msra.mxu0 %v2621_v11  ;;  %v2052_v11 = vcombine.low %v1020_v0, %v1020_v0 }
 0x348   :  { %2214 = vmatprep.subr.bf16.mxu0 %v2633_v13  ;;  %v3381_v13 = vld [vmem:[#allocation10_spill] sm:$0xff] }
 0x34b   :  { %2215 = vmatpush3.bf16.msra.mxu0 %v3373_v27 }
 0x34c   :  { %2216 = vmatprep.subr.bf16.mxu0 %v3374_v53 }
 0x34f   :  { %2217 = vmatpush3.bf16.msra.mxu0 %v3375_v19 }
 0x350   :  { %2218 = vmatprep.subr.bf16.mxu0 %v3376_v17 }
 0x353   :  { %2219 = vmatpush3.bf16.msra.mxu0 %v3377_v3 }
 0x354   :  { %2220 = vmatprep.subr.bf16.mxu0 %v3378_v15 }
 0x357   :  { %2221 = vmatpush3.bf16.msra.mxu0 %v3379_v5 }
 0x358   :  { %2222 = vmatprep.subr.bf16.mxu0 %v3380_v7 }
 0x35b   :  { %2223 = vmatpush3.bf16.msra.mxu0 %v3381_v13 }
 0x35c   :  { %2252 = vmatprep.subr.bf16.mxu0 %v3382_v10 }
 0x35e   :  { %1124 = vmatmul.mubr.bf16.vlgmr.msra.gmra.mrb[16].mxu0 %v2052_v11 }
 0x35f   :  { %2253 = vmatpush3.bf16.msra.mxu0 %v3383_v12  ;;  %1203 = vmatprep.mubr.bf16.mxu0 %v2057_v37 }
 0x360   :  { %2254 = vmatprep.subr.bf16.mxu0 %v3384_v14 }
 0x363   :  { %2255 = vmatpush3.bf16.msra.mxu0 %v3385_v1 }
 0x364   :  { %2256 = vmatprep.subr.bf16.mxu0 %v3386_v16 }
 0x367   :  { %2257 = vmatpush3.bf16.msra.mxu0 %v3387_v18 }
 0x368   :  { %2258 = vmatprep.subr.bf16.mxu0 %v3388_v20  ;;  %v3402_v20 = vld [vmem:[#allocation31_spill] sm:$0xff] }
 0x36b   :  { %2259 = vmatpush3.bf16.msra.mxu0 %v3389_v24 }
 0x36c   :  { %2260 = vmatprep.subr.bf16.mxu0 %v3390_v26 }
 0x36f   :  { %2261 = vmatpush3.bf16.msra.mxu0 %v3391_v28 }
 0x370   :  { %2262 = vmatprep.subr.bf16.mxu0 %v3392_v30 }
 0x373   :  { %2263 = vmatpush3.bf16.msra.mxu0 %v3393_v38 }
 0x374   :  { %2264 = vmatprep.subr.bf16.mxu0 %v3394_v40 }
 0x377   :  { %2265 = vmatpush3.bf16.msra.mxu0 %v3395_v42 }
 0x378   :  { %2266 = vmatprep.subr.bf16.mxu0 %v3396_v44 }
 0x37b   :  { %2267 = vmatpush3.bf16.msra.mxu0 %v3397_v48 }
 0x37c   :  { %2345 = vmatprep.subr.bf16.mxu0 %v3367_v49 }
 0x37e   :  { %1204 = vmatmul.mubr.bf16.vlgmr.msra.gmra.mrb[20].mxu0 %v2056_v46 }
 0x37f   :  { %2346 = vmatpush3.bf16.msra.mxu0 %v3398_v50  ;;  %2353 = vmatprep.mubr.msk.bf16.mxu0 %vm2512_vm0, %v3367_v49 }
 0x380   :  { %2347 = vmatprep.subr.bf16.mxu0 %v3367_v49 }
 0x383   :  { %2348 = vmatpush3.bf16.msra.mxu0 %v3399_v52 }
 0x384   :  { %2349 = vmatprep.subr.bf16.mxu0 %v3367_v49 }
 0x387   :  { %2350 = vmatpush3.bf16.msra.mxu0 %v3400_v54 }
 0x388   :  { %2351 = vmatprep.subr.bf16.mxu0 %v3367_v49 }
 0x38b   :  { %2352 = vmatpush3.bf16.msra.mxu0 %v3401_v55 }
 0x411   :  { %v3163_v33 = vpop.f32.mrb[12].mxu0 }
 0x412   :  { %v1406_v61 = vsel %vm797_vm2, %v3163_v33, 0.0  ;;  %v2335_v35 = vpop.f32.mrb[13].mxu0 }
 0x413   :  { %v1407_v59 = vrot.slane %v1406_v61, 4  ;;  %v1016_v31 = vpop.f32.mrb[14].mxu0 }
 0x414   :  { %v2336_v41 = vpop.f32.mrb[15].mxu0 }
 0x415   :  { %v1408_v0 = vadd.f32 %v1407_v59, %v1406_v61 }
 0x417   :  { %v1409_v43 = vrot.slane %v1408_v0, 2 }
 0x419   :  { %v1410_v47 = vadd.f32 %v1409_v43, %v1408_v0 }
 0x41b   :  { %v1411_v39 = vrot.slane %v1410_v47, 1 }
 0x41d   :  { %v1412_v27 = vadd.f32 %v1411_v39, %v1410_v47 }
 0x41f   :  { %v1413_v53 = vmul.f32 0.125, %v1412_v27 }
 0x421   :  { %v3168_v19 = vsub.f32 %v3163_v33, %v1413_v53 }
 0x423   :  { %1491 = vxpose.xlu0.b32.start.end [1/1] (short) (narrow) %v3168_v19, 64  ;;  %2369 = vmatprep.subr.mxu0 %v3168_v19 }
 0x431   :  { %v2224_v17 = vpop.f32.mrb[16].mxu0 }
 0x432   :  { %v2225_v3 = vpop.f32.mrb[17].mxu0 }
 0x433   :  { %v2226_v15 = vadd.f32 %v2225_v3, %v2224_v17  ;;  %v2227_v5 = vpop.f32.mrb[18].mxu0 }
 0x434   :  { %v2228_v7 = vpop.f32.mrb[19].mxu0 }
 0x435   :  { %v1126_v9 = vadd.f32 %v2226_v15, %v2204_v32 }
 0x437   :  { %v1166_v11 = vadd.f32 %v2248_v57, %v1126_v9 }
 0x451   :  { %v2268_v13 = vpop.f32.mrb[20].mxu0 }
 0x452   :  { %v2269_v37 = vpop.f32.mrb[21].mxu0 }
 0x453   :  { %v2270_v10 = vadd.f32 %v2269_v37, %v2268_v13  ;;  %v2271_v12 = vpop.f32.mrb[22].mxu0 }
 0x454   :  { %v2272_v14 = vpop.f32.mrb[23].mxu0 }
 0x455   :  { %v1206_v1 = vadd.f32 %v2270_v10, %v1166_v11 }
 0x457   :  { %v1211_v16 = vpack.c.bf16 %v1206_v1, %v1206_v1 }
 0x459   :  { %2342 = vmatmul.mubr.msk.bf16.vlgmr.msra.gmra.mrb[20].mxu1 %vm753_vm1, %v1211_v16 }
 0x45a   :  { %2358 = vmatpush3.bf16.msra.mxu1 %v3045_v2  ;;  %2365 = vmatprep.mubr.msk.bf16.mxu1 %vm2512_vm0, %v3367_v49 }
 0x45b   :  { %2359 = vmatprep.subr.bf16.mxu1 %v3367_v49 }
 0x45e   :  { %2360 = vmatpush3.bf16.msra.mxu1 %v3052_v4 }
 0x45f   :  { %2361 = vmatprep.subr.bf16.mxu1 %v3367_v49 }
 0x462   :  { %2362 = vmatpush3.bf16.msra.mxu1 %v3059_v6 }
 0x463   :  { %2363 = vmatprep.subr.bf16.mxu1 %v3367_v49 }
 0x466   :  { %2364 = vmatpush3.bf16.msra.mxu1 %v3066_v8 }
 0x52c   :  { %v1249_v18 = vpop.f32.mrb[20].mxu1 }
 0x52d   :  { %v1250_v24 = vadd.f32 %v1249_v18, %v3402_v20  ;;  %v2343_v26 = vpop.f32.mrb[21].mxu1 }
 0x52e   :  { %v1252_v2 = vpop.f32.mrb[22].mxu1  ;;  %v1507_v26 = vpop.trf.xlu0 }
 0x52f   :  { %v1255_v28 = vsel %vm797_vm2, %v1250_v24, 0.0  ;;  %v2344_v30 = vpop.f32.mrb[23].mxu1 }
 0x530   :  { %v1256_v38 = vrot.slane %v1255_v28, 4  ;;  %v1424_v30 = vmul.f32 %v3168_v19, %v3168_v19 }
 0x532   :  { %v1257_v40 = vadd.f32 %v1256_v38, %v1255_v28  ;;  %v1508_v2 = vpop.trf.xlu0 }
 0x534   :  { %v1258_v42 = vrot.slane %v1257_v40, 2 }
 0x536   :  { %v1259_v4 = vadd.f32 %v1258_v42, %v1257_v40  ;;  %v1509_v28 = vpop.trf.xlu0 }
 0x538   :  { %v1260_v44 = vrot.slane %v1259_v4, 1 }
 0x53a   :  { %v1261_v46 = vadd.f32 %v1260_v44, %v1259_v4 }
 0x53c   :  { %v1262_v48 = vmul.f32 0.125, %v1261_v46 }
 0x53e   :  { %v1263_v6 = vsub.f32 %v1250_v24, %v1262_v48 }
 0x540   :  { %v1264_v50 = vmul.f32 %v1263_v6, %v1263_v6 }
 0x542   :  { %v1265_v52 = vsel %vm797_vm2, %v1264_v50, 0.0 }
 0x543   :  { %v1266_v8 = vrot.slane %v1265_v52, 4 }
 0x545   :  { %v1267_v54 = vadd.f32 %v1266_v8, %v1265_v52 }
 0x547   :  { %v1268_v55 = vrot.slane %v1267_v54, 2 }
 0x549   :  { %v1269_v56 = vadd.f32 %v1268_v55, %v1267_v54 }
 0x54b   :  { %v1270_v58 = vrot.slane %v1269_v56, 1 }
 0x54d   :  { %v1271_v60 = vadd.f32 %v1270_v58, %v1269_v56 }
 0x54f   :  { %v1272_v62 = vmul.f32 0.125, %v1271_v60 }
 0x551   :  { %v1273_v32 = vadd.f32 1e-05, %v1272_v62 }
 0x553   :  { %2503 = vrsqrt.f32 %v1273_v32 }
 0x55d   :  { %v2504_v34 = vpop.eup %2503 }
 0x55e   :  { %v1275_v36 = vmul.f32 %v2504_v34, %v1263_v6 }
 0x560   :  { %v1276_v57 = vmul.f32 %v1275_v36, %v3018_v51 }
 0x562   :  { %v1277_v45 = vadd.f32 %v1276_v57, %v3021_v21 }
 0x564   :  { %v1278_v29 = vmax.f32 %v1277_v45, 0.0 }
 0x566   :  { %v1279_v61 = vpack.c.bf16 %v1278_v29, %v1278_v29 }
 0x568   :  { %2354 = vmatmul.mubr.msk.bf16.vlgmr.msra.gmra.mrb[24].mxu0 %vm797_vm2, %v1279_v61 }
 0x569   :  { %2370 = vmatpush3.msra.mxu0 %v3168_v19  ;;  %2371 = vmatprep.mubr.msk.f32.mxu0 %vm1523_vm3, %v1507_v26 }
 0x570   :  { %2372 = vmatmul.mubr.msk.f32.vlgmr.msra.gmra.mrb[28].mxu0 %vm1523_vm3, %v1508_v2 }
 0x571   :  { %2374 = vmatprep.mubr.msk.f32.mxu0 %vm1523_vm3, %v1509_v28 }
 0x63b   :  { %v1317_v35 = vpop.f32.mrb[24].mxu0 }
 0x63c   :  { %v1318_v59 = vadd.f32 %v1317_v35, %v3100_v22  ;;  %v2355_v31 = vpop.f32.mrb[25].mxu0 }
 0x63d   :  { %v1320_v41 = vpop.f32.mrb[26].mxu0 }
 0x63e   :  { %v1323_v0 = vsel %vm797_vm2, %v1318_v59, 0.0  ;;  %v2356_v43 = vpop.f32.mrb[27].mxu0 }
 0x63f   :  { %v1324_v47 = vrot.slane %v1323_v0, 4 }
 0x641   :  { %v1325_v39 = vadd.f32 %v1324_v47, %v1323_v0 }
 0x643   :  { %v1326_v27 = vrot.slane %v1325_v39, 2  ;;  %v2373_v2 = vpop.f32.mrb[28].mxu0 }
 0x645   :  { %v1327_v51 = vadd.f32 %v1326_v27, %v1325_v39 }
 0x647   :  { %v1328_v53 = vrot.slane %v1327_v51, 1 }
 0x649   :  { %v1329_v21 = vadd.f32 %v1328_v53, %v1327_v51 }
 0x64b   :  { %v1330_v17 = vmul.f32 0.125, %v1329_v21 }
 0x64d   :  { %v1331_v3 = vsub.f32 %v1318_v59, %v1330_v17 }
 0x64f   :  { %v1332_v15 = vmul.f32 %v1331_v3, %v1331_v3 }
 0x651   :  { %v1333_v5 = vsel %vm797_vm2, %v1332_v15, 0.0 }
 0x652   :  { %v1334_v7 = vrot.slane %v1333_v5, 4 }
 0x654   :  { %v1335_v9 = vadd.f32 %v1334_v7, %v1333_v5 }
 0x656   :  { %v1336_v11 = vrot.slane %v1335_v9, 2 }
 0x658   :  { %v1337_v22 = vadd.f32 %v1336_v11, %v1335_v9 }
 0x65a   :  { %v1338_v13 = vrot.slane %v1337_v22, 1 }
 0x65c   :  { %v1339_v37 = vadd.f32 %v1338_v13, %v1337_v22 }
 0x65e   :  { %v1340_v10 = vmul.f32 0.125, %v1339_v37 }
 0x660   :  { %v1341_v12 = vadd.f32 1e-05, %v1340_v10 }
 0x662   :  { %2505 = vrsqrt.f32 %v1341_v12 }
 0x66c   :  { %v2506_v14 = vpop.eup %2505 }
 0x66d   :  { %v1343_v1 = vmul.f32 %v2506_v14, %v1331_v3 }
 0x66f   :  { %v1344_v16 = vmul.f32 %v1343_v1, %v3108_v63  ;;  %v1510_v63 = vpop.trf.xlu0 }
 0x670   :  { %2375 = vmatmul.mubr.msk.f32.gmra.mrb[30].mxu0 %vm1523_vm3, %v1510_v63  ;;  %v1614_v63 = vpop.f32.mrb[29].mxu0 }
 0x671   :  { %v1345_v18 = vadd.f32 %v1344_v16, %v3111_v25  ;;  %v1425_v25 = vsel %vm797_vm2, %v1424_v30, 0.0  ;;  %v1654_v30 = vmul.f32 0.14285715, %v2373_v2 }
 0x672   :  { %v1426_v40 = vrot.slane %v1425_v25, 4 }
 0x673   :  { %v1346_v20 = vmax.f32 %v1345_v18, 0.0  ;;  %v1511_v38 = vpop.trf.xlu0 }
 0x674   :  { %2377 = vmatprep.mubr.msk.f32.mxu0 %vm1523_vm3, %v1511_v38  ;;  %v1427_v4 = vadd.f32 %v1426_v40, %v1425_v25  ;;  %v1653_v40 = vmul.f32 0.14285715, %v1614_v63 }
 0x675   :  { %v1347_v24 = vpack.c.bf16 %v1346_v20, %v1346_v20  ;;  %v1832_v20 = vadd.s32 8, %v3001_v23 }
 0x676   :  { %v1428_v46 = vrot.slane %v1427_v4, 2 }
 0x677   :  { %2366 = vmatmul.mubr.msk.bf16.vlgmr.msra.gmra.mrb[24].mxu1 %vm797_vm2, %v1347_v24  ;;  %v1512_v42 = vpop.trf.xlu0  ;;  %v3403_v24 = vlaneseq }
 0x678   :  { %2378 = vmatmul.mubr.msk.f32.gmra.mrb[32].mxu0 %vm1523_vm3, %v1512_v42  ;;  %v1429_v6 = vadd.f32 %v1428_v46, %v1427_v4  ;;  %v1866_v4 = vmul.f32 %v1654_v30, %v1654_v30  ;;  %v1834_v46 = vadd.s32 24, %v3001_v23 }
 0x679   :  { %v3214_v26 = vand.u32 127, %v3403_v24 }
 0x67a   :  { %v1430_v19 = vrot.slane %v1429_v6, 1 }
 0x67b   :  { %v1513_v44 = vpop.trf.xlu0  ;;  %vm1842_vm9 = vcmp.ne.s32.totalorder %v1832_v20, %v3214_v26  ;;  %vm1841_vm10 = vcmp.ne.s32.totalorder %v3001_v23, %v3214_v26  ;;  %vm1844_vm11 = vcmp.ne.s32.totalorder %v1834_v46, %v3214_v26  ;;  %v1837_v20 = vadd.s32 48, %v3001_v23 }
 0x67c   :  { %2380 = vmatprep.mubr.msk.f32.mxu0 %vm1523_vm3, %v1513_v44  ;;  %v1431_v50 = vadd.f32 %v1430_v19, %v1429_v6  ;;  %v3221_v38 = vsel %vm1842_vm9, 1.0, %v3367_v49  ;;  %v3224_v44 = vsel %vm1841_vm10, 1.0, %v3367_v49  ;;  %v1833_v6 = vadd.s32 16, %v3001_v23 }
 0x67d   :  { %vm1847_vm0 = vcmp.ne.s32.totalorder %v1837_v20, %v3214_v26  ;;  %vm1955_vm1 = vcmp.eq.s32.totalorder %v3214_v26, 2 }
 0x67e   :  { %v1433_v52 = vmul.f32 0.14285715, %v1431_v50  ;;  %vm1843_vm12 = vcmp.ne.s32.totalorder %v1833_v6, %v3214_v26 }
 0x67f   :  { %v1514_v48 = vpop.trf.xlu0 }
 0x680   :  { %2381 = vmatmul.mubr.msk.f32.gmra.mrb[34].mxu0 %vm1523_vm3, %v1514_v48  ;;  %v1443_v8 = vadd.f32 0.0001, %v1433_v52  ;;  %v1865_v48 = vmul.f32 %v1653_v40, %v1653_v40  ;;  %v1874_v52 = vmul.f32 %v3221_v38, %v1866_v4 }
 0x682   :  { %2507 = vrsqrt.f32 %v1443_v8  ;;  %vm1446_vm4 = vcmp.eq.f32.partialorder %v1443_v8, inf  ;;  %v1449_v58 = vand.u32 2147483648, %v1443_v8  ;;  %vm1448_vm5 = vcmp.eq.f32.partialorder %v1443_v8, 0.0 }
 0x68c   :  { %v2508_v54 = vpop.eup %2507 }
 0x68d   :  { %v1445_v55 = vmul.f32 %v2508_v54, %v1443_v8  ;;  %v1873_v54 = vmul.f32 %v3224_v44, %v1865_v48 }
 0x68f   :  { %v1447_v56 = vsel %vm1446_vm4, %v1443_v8, %v1445_v55  ;;  %vm1959_vm4 = vcmask 24576  }
 0x690   :  { %v1450_v60 = vsel %vm1448_vm5, %v1449_v58, %v1447_v56  ;;  %v1882_v58 = vsel %vm797_vm2, %v1874_v52, 0.0 }
 0x691   :  { %v1459_v57 = vsub.f32 1.0, %v1450_v60  ;;  %v1881_v60 = vsel %vm797_vm2, %v1873_v54, 0.0 }
 0x693   :  { %v1460_v41 = vmax.f32 %v1459_v57, 0.0  ;;  %v1883_v57 = vadd.f32 %v1882_v58, %v1881_v60 }
 0x695   :  { %v1462_v47 = vsel %vm1461_vm6, %v1460_v41, 0.0 }
 0x74a   :  { %v1385_v62 = vpop.f32.mrb[24].mxu1 }
 0x74b   :  { %v1415_v32 = vsel %vm797_vm2, %v1385_v62, 0.0  ;;  %v2367_v34 = vpop.f32.mrb[25].mxu1  ;;  %v1391_v36 = vsub.f32 %v3163_v33, %v1385_v62 }
 0x74c   :  { %v1416_v45 = vrot.slane %v1415_v32, 4  ;;  %v1388_v29 = vpop.f32.mrb[26].mxu1 }
 0x74d   :  { %v2368_v61 = vpop.f32.mrb[27].mxu1  ;;  %v1392_v35 = vmul.f32 %v1391_v36, %v1391_v36 }
 0x74e   :  { %v1417_v59 = vadd.f32 %v1416_v45, %v1415_v32  ;;  %v3237_v61 = vsel %vm1844_vm11, 1.0, %v3367_v49 }
 0x74f   :  { %v1393_v31 = vsel %vm797_vm2, %v1392_v35, 0.0 }
 0x750   :  { %v1418_v0 = vrot.slane %v1417_v59, 2  ;;  %1394 = vadd.xlane.f32.xlu1 %v1393_v31 }
 0x752   :  { %v1419_v43 = vadd.f32 %v1418_v0, %v1417_v59  ;;  %v1836_v59 = vadd.s32 40, %v3001_v23 }
 0x754   :  { %v1420_v39 = vrot.slane %v1419_v43, 1  ;;  %1463 = vadd.xlane.f32.xlu1 %v1462_v47  ;;  %vm1846_vm13 = vcmp.ne.s32.totalorder %v1836_v59, %v3214_v26 }
 0x756   :  { %v1421_v27 = vadd.f32 %v1420_v39, %v1419_v43  ;;  %v3241_v43 = vsel %vm1843_vm12, 1.0, %v3367_v49  ;;  %v1835_v39 = vadd.s32 32, %v3001_v23 }
 0x758   :  { %v1422_v51 = vmul.f32 0.125, %v1421_v27  ;;  %vm1845_vm14 = vcmp.ne.s32.totalorder %v1835_v39, %v3214_v26 }
 0x75a   :  { %v1423_v33 = vsub.f32 %v1385_v62, %v1422_v51  ;;  %v2376_v62 = vpop.f32.mrb[30].mxu0 }
 0x75b   :  { %v1656_v45 = vmul.f32 0.14285715, %v2376_v62  ;;  %v1624_v29 = vpop.f32.mrb[31].mxu0 }
 0x75c   :  { %v1434_v53 = vmul.f32 %v1423_v33, %v1423_v33  ;;  %1661 = vxpose.xlu0.b32.start.end [1/1] (short) (narrow) %v1423_v33, 64  ;;  %2383 = vmatprep.subr.mxu1 %v1423_v33  ;;  %v1655_v35 = vmul.f32 0.14285715, %v1624_v29 }
 0x75d   :  { %2384 = vmatpush3.msra.mxu1 %v1423_v33  ;;  %v1868_v0 = vmul.f32 %v1656_v45, %v1656_v45 }
 0x75e   :  { %v1435_v21 = vsel %vm797_vm2, %v1434_v53, 0.0  ;;  %v1867_v47 = vmul.f32 %v1655_v35, %v1655_v35 }
 0x75f   :  { %v1436_v17 = vrot.slane %v1435_v21, 4  ;;  %v1876_v53 = vmul.f32 %v3237_v61, %v1868_v0 }
 0x761   :  { %v1437_v3 = vadd.f32 %v1436_v17, %v1435_v21  ;;  %v1875_v21 = vmul.f32 %v3241_v43, %v1867_v47 }
 0x763   :  { %v1438_v15 = vrot.slane %v1437_v3, 2 }
 0x765   :  { %v1439_v5 = vadd.f32 %v1438_v15, %v1437_v3  ;;  %v1886_v3 = vsel %vm797_vm2, %v1876_v53, 0.0  ;;  %v1884_v15 = vsel %vm797_vm2, %v1875_v21, 0.0 }
 0x767   :  { %v1440_v7 = vrot.slane %v1439_v5, 1 }
 0x769   :  { %v1441_v9 = vadd.f32 %v1440_v7, %v1439_v5  ;;  %v2379_v5 = vpop.f32.mrb[32].mxu0 }
 0x76b   :  { %v1442_v11 = vmul.f32 0.14285715, %v1441_v9 }
 0x76d   :  { %v1451_v22 = vadd.f32 0.0001, %v1442_v11  ;;  %v1885_v11 = vadd.f32 %v1884_v15, %v1883_v57 }
 0x76f   :  { %2509 = vrsqrt.f32 %v1451_v22  ;;  %vm1454_vm7 = vcmp.eq.f32.partialorder %v1451_v22, inf  ;;  %v1457_v10 = vand.u32 2147483648, %v1451_v22  ;;  %vm1456_vm8 = vcmp.eq.f32.partialorder %v1451_v22, 0.0 }
 0x779   :  { %v2510_v13 = vpop.eup %2509 }
 0x77a   :  { %v1453_v37 = vmul.f32 %v2510_v13, %v1451_v22  ;;  %v1634_v13 = vpop.f32.mrb[33].mxu0 }
 0x77c   :  { %v1455_v12 = vsel %vm1454_vm7, %v1451_v22, %v1453_v37  ;;  %v1658_v22 = vmul.f32 0.14285715, %v2379_v5  ;;  %v3253_v37 = vsel %vm1846_vm13, 1.0, %v3367_v49 }
 0x77d   :  { %v1458_v14 = vsel %vm1456_vm8, %v1457_v10, %v1455_v12  ;;  %v1657_v10 = vmul.f32 0.14285715, %v1634_v13 }
 0x77e   :  { %v1475_v1 = vsub.f32 1.0, %v1458_v14  ;;  %v1870_v12 = vmul.f32 %v1658_v22, %v1658_v22  ;;  %v3256_v14 = vsel %vm1845_vm14, 1.0, %v3367_v49 }
 0x780   :  { %v1476_v16 = vmax.f32 %v1475_v1, 0.0  ;;  %v1887_v1 = vadd.f32 %v1886_v3, %v1885_v11  ;;  %v1878_v2 = vmul.f32 %v3253_v37, %v1870_v12 }
 0x782   :  { %v1477_v18 = vsel %vm1461_vm6, %v1476_v16, 0.0  ;;  %v1838_v16 = vadd.s32 56, %v3001_v23  ;;  %v1890_v30 = vsel %vm797_vm2, %v1878_v2, 0.0 }
 0x783   :  { %1478 = vadd.xlane.f32.xlu1 %v1477_v18  ;;  %v1869_v18 = vmul.f32 %v1657_v10, %v1657_v10 }
 0x784   :  { %vm1848_vm15 = vcmp.ne.s32.totalorder %v1838_v16, %v3214_v26 }
 0x785   :  { %v3269_v46 = vsel %vm1848_vm15, 1.0, %v3367_v49 }
 0x7dc   :  { %v1677_v28 = vpop.trf.xlu0 }
 0x7dd   :  { %2385 = vmatprep.mubr.msk.f32.mxu1 %vm1523_vm3, %v1677_v28  ;;  %v1395_v25 = vpop.xlane.xlu1 %1394  ;;  %v1877_v28 = vmul.f32 %v3256_v14, %v1869_v18 }
 0x7de   :  { %v1396_v42 = vrot.slane %v1395_v25, 4 }
 0x7df   :  { %v1888_v63 = vsel %vm797_vm2, %v1877_v28, 0.0 }
 0x7e0   :  { %v1397_v19 = vadd.f32 %v1396_v42, %v1395_v25  ;;  %v1678_v50 = vpop.trf.xlu0  ;;  %v2382_v25 = vpop.f32.mrb[34].mxu0  ;;  %v1889_v42 = vadd.f32 %v1888_v63, %v1887_v1 }
 0x7e1   :  { %2386 = vmatmul.mubr.msk.f32.vlgmr.msra.gmra.mrb[28].mxu1 %vm1523_vm3, %v1678_v50  ;;  %v1464_v8 = vpop.xlane.xlu1 %1463  ;;  %v1660_v4 = vmul.f32 0.14285715, %v2382_v25  ;;  %v1644_v23 = vpop.f32.mrb[35].mxu0 }
 0x7e2   :  { %v1398_v55 = vrot.slane %v1397_v19, 2  ;;  %v1465_v56 = vrot.slane %v1464_v8, 4  ;;  %v1659_v48 = vmul.f32 0.14285715, %v1644_v23  ;;  %v1891_v50 = vadd.f32 %v1890_v30, %v1889_v42 }
 0x7e3   :  { %v1872_v6 = vmul.f32 %v1660_v4, %v1660_v4 }
 0x7e4   :  { %v1466_v32 = vadd.f32 %v1465_v56, %v1464_v8  ;;  %v1679_v34 = vpop.trf.xlu0  ;;  %v1399_v36 = vadd.f32 %v1398_v55, %v1397_v19  ;;  %v3272_v19 = vsel %vm1847_vm0, 1.0, %v3367_v49  ;;  %v1871_v52 = vmul.f32 %v1659_v48, %v1659_v48 }
 0x7e5   :  { %2388 = vmatprep.mubr.msk.f32.mxu1 %vm1523_vm3, %v1679_v34  ;;  %v1880_v54 = vmul.f32 %v3269_v46, %v1872_v6 }
 0x7e6   :  { %v1467_v31 = vrot.slane %v1466_v32, 2  ;;  %v1400_v41 = vrot.slane %v1399_v36, 1  ;;  %v1879_v55 = vmul.f32 %v3272_v19, %v1871_v52 }
 0x7e7   :  { %v1894_v58 = vsel %vm797_vm2, %v1880_v54, 0.0 }
 0x7e8   :  { %v1680_v27 = vpop.trf.xlu0  ;;  %v1401_v51 = vadd.f32 %v1400_v41, %v1399_v36  ;;  %v1468_v33 = vadd.f32 %v1467_v31, %v1466_v32  ;;  %v1892_v56 = vsel %vm797_vm2, %v1879_v55, 0.0 }
 0x7e9   :  { %2389 = vmatmul.mubr.msk.f32.gmra.mrb[30].mxu1 %vm1523_vm3, %v1680_v27  ;;  %v1893_v60 = vadd.f32 %v1892_v56, %v1891_v50 }
 0x7ea   :  { %2397 = vpush %v1401_v51  ;;  %v1469_v17 = vrot.slane %v1468_v33, 1 }
 0x7eb   :  { %v1895_v62 = vadd.f32 %v1894_v58, %v1893_v60 }
 0x7ec   :  { %v1681_v7 = vpop.trf.xlu0  ;;  %v1470_v9 = vadd.f32 %v1469_v17, %v1468_v33 }
 0x7ed   :  { %2391 = vmatprep.mubr.msk.f32.mxu1 %vm1523_vm3, %v1681_v7  ;;  %1896 = vadd.xlane.f32.xlu1 %v1895_v62 }
 0x7ee   :  { %2399 = vpush %v1470_v9 }
 0x7f0   :  { %v1682_v24 = vpop.trf.xlu0 }
 0x7f1   :  { %2392 = vmatmul.mubr.msk.f32.gmra.mrb[32].mxu1 %vm1523_vm3, %v1682_v24 }
 0x7f4   :  { %v1683_v40 = vpop.trf.xlu0 }
 0x7f5   :  { %2394 = vmatprep.mubr.msk.f32.mxu1 %vm1523_vm3, %v1683_v40 }
 0x7f8   :  { %v1684_v8 = vpop.trf.xlu0 }
 0x7f9   :  { %2395 = vmatmul.mubr.msk.f32.gmra.mrb[34].mxu1 %vm1523_vm3, %v1684_v8  ;;  %vm1953_vm3 = vcmp.eq.s32.totalorder %v3214_v26, 0 }
 0x810   :  { %v1479_v32 = vpop.xlane.xlu1 %1478 }
 0x811   :  { %v1480_v34 = vrot.slane %v1479_v32, 4 }
 0x813   :  { %v1481_v49 = vadd.f32 %v1480_v34, %v1479_v32 }
 0x815   :  { %v1482_v36 = vrot.slane %v1481_v49, 2 }
 0x817   :  { %v1483_v57 = vadd.f32 %v1482_v36, %v1481_v49 }
 0x819   :  { %v1484_v45 = vrot.slane %v1483_v57, 1 }
 0x81b   :  { %v1485_v29 = vadd.f32 %v1484_v45, %v1483_v57  ;;  %s2398_s1 = spop %2397 }
 0x81d   :  { %2401 = vpush %v1485_v29 }
 0x81f   :  { %s2400_s22 = spop %2399 }
 0x84e   :  { %s2402_s0 = spop %2401 }
 0x87a   :  { %v1897_v35 = vpop.xlane.xlu1 %1896 }
 0x87b   :  { %v1898_v59 = vrot.slane %v1897_v35, 4 }
 0x87d   :  { %v1899_v31 = vadd.f32 %v1898_v59, %v1897_v35 }
 0x87f   :  { %v1900_v41 = vrot.slane %v1899_v31, 2 }
 0x881   :  { %v1901_v0 = vadd.f32 %v1900_v41, %v1899_v31  ;;  %v1403_v41 = vstv %s2398_s1 }
 0x883   :  { %v1902_v47 = vrot.slane %v1901_v0, 1 }
 0x885   :  { %v1903_v39 = vadd.f32 %v1902_v47, %v1901_v0  ;;  %v1405_v47 = vmul.f32 0.001953125, %v1403_v41 }
 0x887   :  { %2403 = vpush %v1903_v39 }
 0x8b4   :  { %v2387_v27 = vpop.f32.mrb[28].mxu1 }
 0x8b5   :  { %v1823_v51 = vmul.f32 0.14285715, %v2387_v27  ;;  %v1783_v33 = vpop.f32.mrb[29].mxu1 }
 0x8b6   :  { %v1822_v53 = vmul.f32 0.14285715, %v1783_v33  ;;  %v1949_v33 = vmul.f32 25.0, %v1405_v47 }
 0x8b7   :  { %v1907_v21 = vmul.f32 %v1823_v51, %v1823_v51 }
 0x8b8   :  { %v1906_v17 = vmul.f32 %v1822_v53, %v1822_v53  ;;  %s2404_s23 = spop %2403 }
 0x8b9   :  { %v1915_v3 = vmul.f32 %v3221_v38, %v1907_v21  ;;  %v1905_v27 = vstv %s2404_s23 }
 0x8ba   :  { %v1914_v15 = vmul.f32 %v3224_v44, %v1906_v17 }
 0x8bb   :  { %v1923_v5 = vsel %vm797_vm2, %v1915_v3, 0.0 }
 0x8bc   :  { %v1922_v7 = vsel %vm797_vm2, %v1914_v15, 0.0  ;;  %v2390_v9 = vpop.f32.mrb[30].mxu1 }
 0x8bd   :  { %v1924_v11 = vadd.f32 %v1923_v5, %v1922_v7  ;;  %v1825_v22 = vmul.f32 0.14285715, %v2390_v9  ;;  %v1793_v13 = vpop.f32.mrb[31].mxu1 }
 0x8be   :  { %v1824_v10 = vmul.f32 0.14285715, %v1793_v13 }
 0x8bf   :  { %v1909_v12 = vmul.f32 %v1825_v22, %v1825_v22 }
 0x8c0   :  { %v1908_v1 = vmul.f32 %v1824_v10, %v1824_v10 }
 0x8c1   :  { %v1917_v16 = vmul.f32 %v3237_v61, %v1909_v12 }
 0x8c2   :  { %v1916_v18 = vmul.f32 %v3241_v43, %v1908_v1 }
 0x8c3   :  { %v1927_v28 = vsel %vm797_vm2, %v1917_v16, 0.0 }
 0x8c4   :  { %v1925_v20 = vsel %vm797_vm2, %v1916_v18, 0.0  ;;  %v2393_v38 = vpop.f32.mrb[32].mxu1 }
 0x8c5   :  { %v1926_v24 = vadd.f32 %v1925_v20, %v1924_v11  ;;  %v1827_v44 = vmul.f32 0.14285715, %v2393_v38  ;;  %v1803_v2 = vpop.f32.mrb[33].mxu1 }
 0x8c6   :  { %v1826_v30 = vmul.f32 0.14285715, %v1803_v2 }
 0x8c7   :  { %v1911_v63 = vmul.f32 %v1827_v44, %v1827_v44  ;;  %v1928_v25 = vadd.f32 %v1927_v28, %v1926_v24 }
 0x8c8   :  { %v1910_v40 = vmul.f32 %v1826_v30, %v1826_v30 }
 0x8c9   :  { %v1919_v42 = vmul.f32 %v3253_v37, %v1911_v63 }
 0x8ca   :  { %v1918_v4 = vmul.f32 %v3256_v14, %v1910_v40 }
 0x8cb   :  { %v1931_v50 = vsel %vm797_vm2, %v1919_v42, 0.0 }
 0x8cc   :  { %v1929_v61 = vsel %vm797_vm2, %v1918_v4, 0.0  ;;  %v2396_v23 = vpop.f32.mrb[34].mxu1 }
 0x8cd   :  { %v1930_v43 = vadd.f32 %v1929_v61, %v1928_v25  ;;  %v1829_v48 = vmul.f32 0.14285715, %v2396_v23  ;;  %v1813_v6 = vpop.f32.mrb[35].mxu1 }
 0x8ce   :  { %v1828_v52 = vmul.f32 0.14285715, %v1813_v6 }
 0x8cf   :  { %v1913_v8 = vmul.f32 %v1829_v48, %v1829_v48  ;;  %v1932_v54 = vadd.f32 %v1931_v50, %v1930_v43 }
 0x8d0   :  { %v1912_v55 = vmul.f32 %v1828_v52, %v1828_v52 }
 0x8d1   :  { %v1921_v56 = vmul.f32 %v3269_v46, %v1913_v8  ;;  %v1487_v46 = vstv %s2402_s0 }
 0x8d2   :  { %v1920_v58 = vmul.f32 %v3272_v19, %v1912_v55  ;;  %v1472_v19 = vstv %s2400_s22  ;;  %v1488_v35 = vmul.f32 0.015625, %v1487_v46 }
 0x8d3   :  { %v1935_v14 = vsel %vm797_vm2, %v1921_v56, 0.0  ;;  %v1474_v59 = vmul.f32 0.015625, %v1472_v19 }
 0x8d4   :  { %v1933_v37 = vsel %vm797_vm2, %v1920_v58, 0.0  ;;  %vm1954_vm2 = vcmp.eq.s32.totalorder %v3214_v26, 1 }
 0x8d5   :  { %v1934_v60 = vadd.f32 %v1933_v37, %v1932_v54  ;;  %v1489_v31 = vadd.f32 %v1488_v35, %v1474_v59 }
 0x8d7   :  { %v1936_v62 = vadd.f32 %v1935_v14, %v1934_v60  ;;  %v1490_v0 = vmul.f32 0.5, %v1489_v31 }
 0x8d9   :  { %1937 = vadd.xlane.f32.xlu1 %v1936_v62  ;;  %v1950_v39 = vmul.f32 25.0, %v1490_v0 }
 0x8db   :  { %v1951_v17 = vadd.f32 %v1950_v39, %v1949_v33 }
 0x966   :  { %v1938_v32 = vpop.xlane.xlu1 %1937 }
 0x967   :  { %v1939_v34 = vrot.slane %v1938_v32, 4 }
 0x969   :  { %v1940_v49 = vadd.f32 %v1939_v34, %v1938_v32 }
 0x96b   :  { %v1941_v36 = vrot.slane %v1940_v49, 2 }
 0x96d   :  { %v1942_v57 = vadd.f32 %v1941_v36, %v1940_v49 }
 0x96f   :  { %v1943_v45 = vrot.slane %v1942_v57, 1 }
 0x971   :  { %v1944_v29 = vadd.f32 %v1943_v45, %v1942_v57 }
 0x973   :  { %2405 = vpush %v1944_v29 }
 0x9a4   :  { %s2406_s3 = spop %2405 }
 0x9a5   :  { %v1946_v51 = vstv %s2406_s3 }
 0x9a6   :  { %v1947_v53 = vadd.f32 %v1946_v51, %v1905_v27 }
 0x9a8   :  { %v1948_v21 = vmul.f32 0.015625, %v1947_v53 }
 0x9aa   :  { %v1952_v3 = vadd.f32 %v1951_v17, %v1948_v21  ;;  %v1956_v15 = vsel %vm1955_vm1, %v1490_v0, %v1948_v21 }
 0x9ab   :  { %v1957_v5 = vsel %vm1954_vm2, %v1405_v47, %v1956_v15 }
 0x9ac   :  { %v1958_v7 = vsel %vm1953_vm3, %v1952_v3, %v1957_v5 }
 0x9ad   :  { %1960 = vst.msk [vmem:[%s3308_s7] sm:$0x1] %vm1959_vm4, %v1958_v7 }

</bundles_post_ra>
